<compile_context>
chip_gen: v7x
topology: tpu7x:2x2x1
jax: 0.10.0
libtpu: 0.0.40
codegen_flags: <defaults>
</compile_context>

<pallas_src>
import functools

import jax
import jax.numpy as jnp
from jax.experimental import pallas as pl
from jax.experimental.pallas import tpu as pltpu


# ----------------------------------------------------------------------------
# Pallas kernels
# ----------------------------------------------------------------------------
def _matmul_bias_act_kernel(x_ref, w_ref, b_ref, o_ref, *, relu: bool):
    """o = x @ w + b (optionally ReLU).  x:(bm,K) bf16, w:(K,N) bf16, b:(1,N) f32."""
    acc = jnp.dot(x_ref[...], w_ref[...], preferred_element_type=jnp.float32)
    acc = acc + b_ref[...]
    if relu:
        acc = jnp.maximum(acc, 0.0)
    o_ref[...] = acc.astype(o_ref.dtype)


def _matmul_bias_softmax_kernel(x_ref, w_ref, b_ref, o_ref, *,
                                action_num: int, num_atoms: int):
    """Fused fc2 + per-action softmax: o = softmax_groups(x @ w + b)."""
    acc = jnp.dot(x_ref[...], w_ref[...], preferred_element_type=jnp.float32)
    acc = acc + b_ref[...]
    parts = []
    for a in range(action_num):           # static, small loop over action groups
        lo, hi = a * num_atoms, (a + 1) * num_atoms
        s = acc[:, lo:hi]
        m = jnp.max(s, axis=-1, keepdims=True)
        e = jnp.exp(s - m)
        denom = jnp.sum(e, axis=-1, keepdims=True)
        parts.append(e * pl.reciprocal(denom, approx=True))
    o_ref[...] = jnp.concatenate(parts, axis=-1).astype(o_ref.dtype)


# ----------------------------------------------------------------------------
# Pallas call wrappers (grid over M, auto double-buffered pipeline)
# ----------------------------------------------------------------------------
def _compiler_params():
    return pltpu.CompilerParams(
        dimension_semantics=("parallel",),
        vmem_limit_bytes=32 * 1024 * 1024,
    )


def _gemm_cost(M, K, N, x_itemsize, w_itemsize, out_itemsize, transcendentals=0):
    return pl.CostEstimate(
        flops=2 * M * K * N,
        transcendentals=transcendentals,
        bytes_accessed=(M * K * x_itemsize + K * N * w_itemsize
                        + N * 4 + M * N * out_itemsize),
    )


def pallas_linear(x, w, b, *, relu: bool, out_dtype=jnp.bfloat16, block_m: int = 256):
    """(M,K) @ (K,N) + (1,N) -> (M,N), tiled over M."""
    M, K = x.shape
    Kw, N = w.shape
    assert K == Kw and b.shape == (1, N)
    bm = min(block_m, M)
    grid = (pl.cdiv(M, bm),)
    kernel = functools.partial(_matmul_bias_act_kernel, relu=relu)
    return pl.pallas_call(
        kernel,
        out_shape=jax.ShapeDtypeStruct((M, N), out_dtype),
        grid=grid,
        in_specs=[
            pl.BlockSpec((bm, K), lambda i: (i, 0)),   # row tile of x
            pl.BlockSpec((K, N), lambda i: (0, 0)),    # whole weight, fetched once
            pl.BlockSpec((1, N), lambda i: (0, 0)),    # bias row, fetched once
        ],
        out_specs=pl.BlockSpec((bm, N), lambda i: (i, 0)),
        compiler_params=_compiler_params(),
        cost_estimate=_gemm_cost(M, K, N, x.dtype.itemsize, w.dtype.itemsize,
                                 jnp.dtype(out_dtype).itemsize),
    )(x, w, b)


def pallas_linear_softmax(x, w, b, *, action_num: int, num_atoms: int,
                          block_m: int = 128):
    """Fused fc2 GEMM + per-action softmax: (M,K)@(K,A*N)+b -> probabilities."""
    M, K = x.shape
    Kw, N = w.shape
    assert K == Kw and N == action_num * num_atoms and b.shape == (1, N)
    bm = min(block_m, M)
    grid = (pl.cdiv(M, bm),)
    kernel = functools.partial(_matmul_bias_softmax_kernel,
                               action_num=action_num, num_atoms=num_atoms)
    return pl.pallas_call(
        kernel,
        out_shape=jax.ShapeDtypeStruct((M, N), jnp.float32),
        grid=grid,
        in_specs=[
            pl.BlockSpec((bm, K), lambda i: (i, 0)),
            pl.BlockSpec((K, N), lambda i: (0, 0)),
            pl.BlockSpec((1, N), lambda i: (0, 0)),
        ],
        out_specs=pl.BlockSpec((bm, N), lambda i: (i, 0)),
        compiler_params=_compiler_params(),
        cost_estimate=_gemm_cost(M, K, N, x.dtype.itemsize, w.dtype.itemsize, 4,
                                 transcendentals=M * N),
    )(x, w, b)


# ----------------------------------------------------------------------------
# Conv-as-GEMM glue (patch extraction in plain JAX, GEMM in Pallas)
# ----------------------------------------------------------------------------
def conv2d_relu(x_nhwc, w_mat, b_row, *, ksize: int, stride: int,
                out_channels: int, block_m: int = 512):
    """Valid-padding Conv2d + ReLU via patch extraction + Pallas GEMM.

    x_nhwc : (B, H, W, C) bf16
    w_mat  : (C*K*K, O) bf16 with feature order (c, kh, kw) (prepared once)
    b_row  : (1, O) f32
    """
    B = x_nhwc.shape[0]
    # Output feature order of conv_general_dilated_patches is (c, kh, kw).
    patches = jax.lax.conv_general_dilated_patches(
        x_nhwc, (ksize, ksize), (stride, stride), "VALID",
        dimension_numbers=("NHWC", "OIHW", "NHWC"))
    _, OH, OW, F = patches.shape
    out = pallas_linear(patches.reshape(B * OH * OW, F), w_mat, b_row,
                        relu=True, out_dtype=jnp.bfloat16, block_m=block_m)
    return out.reshape(B, OH, OW, out_channels)


# ----------------------------------------------------------------------------
# Parameter construction (PyTorch-default-style uniform init, torch layouts)
# ----------------------------------------------------------------------------
def _uniform(key, shape, fan_in):
    bound = 1.0 / jnp.sqrt(float(fan_in))
    return jax.random.uniform(key, shape, jnp.float32, -bound, bound)


def init_c51_params(key, c, h, w, action_num, num_atoms):
    keys = jax.random.split(key, 10)
    params = {}
    params["w1"] = _uniform(keys[0], (32, c, 8, 8), c * 8 * 8)
    params["b1"] = _uniform(keys[1], (32,), c * 8 * 8)
    params["w2"] = _uniform(keys[2], (64, 32, 4, 4), 32 * 4 * 4)
    params["b2"] = _uniform(keys[3], (64,), 32 * 4 * 4)
    params["w3"] = _uniform(keys[4], (64, 64, 3, 3), 64 * 3 * 3)
    params["b3"] = _uniform(keys[5], (64,), 64 * 3 * 3)
    h1, w1 = (h - 8) // 4 + 1, (w - 8) // 4 + 1
    h2, w2 = (h1 - 4) // 2 + 1, (w1 - 4) // 2 + 1
    h3, w3 = h2 - 2, w2 - 2
    feat_dim = 64 * h3 * w3
    params["fw1"] = _uniform(keys[6], (512, feat_dim), feat_dim)   # torch (out, in)
    params["fb1"] = _uniform(keys[7], (512,), feat_dim)
    params["fw2"] = _uniform(keys[8], (action_num * num_atoms, 512), 512)
    params["fb2"] = _uniform(keys[9], (action_num * num_atoms,), 512)
    return params, (h3, w3), feat_dim


def prepare_c51_params(params, h3, w3):
    """One-time layout preprocessing: fold all transposes into the weights, cast bf16."""
    prep = {}

    def conv_w(w):  # torch (O, C, K, K) -> (C*K*K, O) matching patch order (c, kh, kw)
        O, C, K, _ = w.shape
        return jnp.transpose(w, (1, 2, 3, 0)).reshape(C * K * K, O).astype(jnp.bfloat16)

    prep["w1"], prep["b1"] = conv_w(params["w1"]), params["b1"].reshape(1, -1)
    prep["w2"], prep["b2"] = conv_w(params["w2"]), params["b2"].reshape(1, -1)
    prep["w3"], prep["b3"] = conv_w(params["w3"]), params["b3"].reshape(1, -1)

    # fc1: torch weight (512, feat) with feat in NCHW (c, h, w) flatten order ->
    # (h*w*c, 512) so the NHWC conv output can be flattened with a plain reshape.
    fw1 = params["fw1"].reshape(512, 64, h3, w3)
    prep["fw1"] = (jnp.transpose(fw1, (2, 3, 1, 0))
                   .reshape(h3 * w3 * 64, 512).astype(jnp.bfloat16))
    prep["fb1"] = params["fb1"].reshape(1, -1)

    # fc2: torch (A*N, 512) -> (512, A*N)
    prep["fw2"] = jnp.transpose(params["fw2"], (1, 0)).astype(jnp.bfloat16)
    prep["fb2"] = params["fb2"].reshape(1, -1)
    return prep


# ----------------------------------------------------------------------------
# C51 forward
# ----------------------------------------------------------------------------
def c51_forward(prep, x_nchw, action_num, num_atoms):
    """x_nchw: (B, C, H, W) float32 -> (B, action_num, num_atoms) distributions."""
    x = jnp.asarray(x_nchw, jnp.float32)
    x = jnp.transpose(x, (0, 2, 3, 1)).astype(jnp.bfloat16)   # NCHW -> NHWC, bf16 operands
    B = x.shape[0]

    x = conv2d_relu(x, prep["w1"], prep["b1"], ksize=8, stride=4, out_channels=32)
    x = conv2d_relu(x, prep["w2"], prep["b2"], ksize=4, stride=2, out_channels=64)
    x = conv2d_relu(x, prep["w3"], prep["b3"], ksize=3, stride=1, out_channels=64)

    feat = x.reshape(B, -1)                                    # NHWC flatten (fw1 pre-permuted)
    h = pallas_linear(feat, prep["fw1"], prep["fb1"],
                      relu=True, out_dtype=jnp.bfloat16, block_m=256)   # (B, 512)
    probs = pallas_linear_softmax(h, prep["fw2"], prep["fb2"],
                                  action_num=action_num, num_atoms=num_atoms)
    return probs.reshape(B, action_num, num_atoms)


# Pure-JAX f32 reference (torch semantics) for validation.
def c51_reference(params, x_nchw, action_num, num_atoms):
    x = jnp.asarray(x_nchw, jnp.float32)
    dn = jax.lax.conv_dimension_numbers(x.shape, params["w1"].shape,
                                        ("NCHW", "OIHW", "NCHW"))

    def conv(x, w, b, s):
        y = jax.lax.conv_general_dilated(x, w, (s, s), "VALID",
                                         dimension_numbers=dn)
        return jax.nn.relu(y + b[None, :, None, None])

    x = conv(x, params["w1"], params["b1"], 4)
    x = conv(x, params["w2"], params["b2"], 2)
    x = conv(x, params["w3"], params["b3"], 1)
    B = x.shape[0]
    feat = x.reshape(B, -1)
    h = jax.nn.relu(feat @ params["fw1"].T + params["fb1"])
    logits = h @ params["fw2"].T + params["fb2"]
    probs = jax.nn.softmax(logits.reshape(B * action_num, num_atoms), axis=-1)
    return probs.reshape(B, action_num, num_atoms)


if __name__ == "__main__":
    # Small but valid shapes for the Atari conv stack (needs H, W >= 36).
    B, C, H, W = 2, 4, 36, 36
    action_num, num_atoms = 6, 51

    key = jax.random.PRNGKey(0)
    pkey, xkey = jax.random.split(key)
    params, (h3, w3), feat_dim = init_c51_params(pkey, C, H, W, action_num, num_atoms)
    prep = prepare_c51_params(params, h3, w3)

    x = jax.random.normal(xkey, (B, C, H, W), jnp.float32)

    fwd = jax.jit(functools.partial(c51_forward,
                                    action_num=action_num, num_atoms=num_atoms))
    out = jax.block_until_ready(fwd(prep, x))
    ref = jax.block_until_ready(c51_reference(params, x, action_num, num_atoms))

    assert out.shape == (B, action_num, num_atoms)
    # approx reciprocal in the fused softmax => sums to 1 within EUP-approx error
    assert jnp.allclose(jnp.sum(out, axis=-1), 1.0, atol=5e-3)
    # bf16 MXU operands with f32 accumulation => relaxed tolerance vs f32 reference
    assert jnp.allclose(out, ref, atol=2e-2, rtol=2e-2)

    print("KERNEL_OK")
</pallas_src>

<mosaic_0001>
module attributes {stable_mosaic.version = 11 : i64} {
  func.func @_matmul_bias_act_kernel(%arg0: i32, %arg1: memref<128x256xbf16, #tpu.memory_space<vmem>>, %arg2: memref<256x32xbf16, #tpu.memory_space<vmem>>, %arg3: memref<1x32xf32, #tpu.memory_space<vmem>>, %arg4: memref<128x32xbf16, #tpu.memory_space<vmem>>) attributes {dimension_semantics = [#tpu.dimension_semantics<parallel>], iteration_bounds = array<i64: 1>, scalar_prefetch = 0 : i64, scratch_operands = 0 : i64, tpu.core_type = #tpu.core_type<tc>, window_params = [{transform_indices = @transform_0, window_bounds = array<i64: 128, 256>}, {pipeline_mode = #tpu.pipeline_mode<synchronous>, transform_indices = @transform_1, window_bounds = array<i64: 256, 32>}, {pipeline_mode = #tpu.pipeline_mode<synchronous>, transform_indices = @transform_2, window_bounds = array<i64: 1, 32>}, {transform_indices = @transform_3, window_bounds = array<i64: 128, 32>}]} {
    %c0 = arith.constant 0 : index
    %c0_0 = arith.constant 0 : index
    %0 = vector.load %arg1[%c0, %c0_0] : memref<128x256xbf16, #tpu.memory_space<vmem>>, vector<128x256xbf16>
    %c0_1 = arith.constant 0 : index
    %c0_2 = arith.constant 0 : index
    %1 = vector.load %arg2[%c0_1, %c0_2] : memref<256x32xbf16, #tpu.memory_space<vmem>>, vector<256x32xbf16>
    %cst = arith.constant dense<0.000000e+00> : vector<128x32xf32>
    %2 = tpu.matmul %0, %1, %cst {dimension_numbers = #tpu.dot_dimension_numbers<[1], [0], [0], [1], [0, 0, 1, 1], [], []>} : vector<128x256xbf16>, vector<256x32xbf16>, vector<128x32xf32> -> vector<128x32xf32>
    %c0_3 = arith.constant 0 : index
    %c0_4 = arith.constant 0 : index
    %3 = vector.load %arg3[%c0_3, %c0_4] : memref<1x32xf32, #tpu.memory_space<vmem>>, vector<1x32xf32>
    %4 = vector.broadcast %3 : vector<1x32xf32> to vector<128x32xf32>
    %5 = arith.addf %2, %4 : vector<128x32xf32>
    %cst_5 = arith.constant 0.000000e+00 : f32
    %6 = vector.broadcast %cst_5 : f32 to vector<128x32xf32>
    %7 = arith.maximumf %5, %6 : vector<128x32xf32>
    %8 = arith.truncf %7 : vector<128x32xf32> to vector<128x32xbf16>
    %c0_6 = arith.constant 0 : index
    %c0_7 = arith.constant 0 : index
    %9 = vector.load %arg4[%c0_6, %c0_7] : memref<128x32xbf16, #tpu.memory_space<vmem>>, vector<128x32xbf16>
    tpu.vector_store %arg4[%c0_6, %c0_7], %8 {strides = array<i32>} : memref<128x32xbf16, #tpu.memory_space<vmem>>, vector<128x32xbf16>,
    return
  }
  func.func @transform_0(%arg0: i32) -> (i32, i32) {
    %c0_i32 = arith.constant 0 : i32
    %c0_i32_0 = arith.constant 0 : i32
    return %arg0, %c0_i32 : i32, i32
  }
  func.func @transform_1(%arg0: i32) -> (i32, i32) {
    %c0_i32 = arith.constant 0 : i32
    %c0_i32_0 = arith.constant 0 : i32
    %c0_i32_1 = arith.constant 0 : i32
    return %c0_i32, %c0_i32_0 : i32, i32
  }
  func.func @transform_2(%arg0: i32) -> (i32, i32) {
    %c0_i32 = arith.constant 0 : i32
    %c0_i32_0 = arith.constant 0 : i32
    %c0_i32_1 = arith.constant 0 : i32
    return %c0_i32, %c0_i32_0 : i32, i32
  }
  func.func @transform_3(%arg0: i32) -> (i32, i32) {
    %c0_i32 = arith.constant 0 : i32
    %c0_i32_0 = arith.constant 0 : i32
    return %arg0, %c0_i32 : i32, i32
  }
}

module attributes {stable_mosaic.version = 11 : i64} {
  func.func @_matmul_bias_act_kernel(%arg0: i32, %arg1: memref<18x512xbf16, #tpu.memory_space<vmem>>, %arg2: memref<512x64xbf16, #tpu.memory_space<vmem>>, %arg3: memref<1x64xf32, #tpu.memory_space<vmem>>, %arg4: memref<18x64xbf16, #tpu.memory_space<vmem>>) attributes {dimension_semantics = [#tpu.dimension_semantics<parallel>], iteration_bounds = array<i64: 1>, scalar_prefetch = 0 : i64, scratch_operands = 0 : i64, tpu.core_type = #tpu.core_type<tc>, window_params = [{transform_indices = @transform_0, window_bounds = array<i64: 18, 512>}, {pipeline_mode = #tpu.pipeline_mode<synchronous>, transform_indices = @transform_1, window_bounds = array<i64: 512, 64>}, {pipeline_mode = #tpu.pipeline_mode<synchronous>, transform_indices = @transform_2, window_bounds = array<i64: 1, 64>}, {transform_indices = @transform_3, window_bounds = array<i64: 18, 64>}]} {
    %c0 = arith.constant 0 : index
    %c0_0 = arith.constant 0 : index
    %0 = vector.load %arg1[%c0, %c0_0] : memref<18x512xbf16, #tpu.memory_space<vmem>>, vector<18x512xbf16>
    %c0_1 = arith.constant 0 : index
    %c0_2 = arith.constant 0 : index
    %1 = vector.load %arg2[%c0_1, %c0_2] : memref<512x64xbf16, #tpu.memory_space<vmem>>, vector<512x64xbf16>
    %cst = arith.constant dense<0.000000e+00> : vector<18x64xf32>
    %2 = tpu.matmul %0, %1, %cst {dimension_numbers = #tpu.dot_dimension_numbers<[1], [0], [0], [1], [0, 0, 1, 1], [], []>} : vector<18x512xbf16>, vector<512x64xbf16>, vector<18x64xf32> -> vector<18x64xf32>
    %c0_3 = arith.constant 0 : index
    %c0_4 = arith.constant 0 : index
    %3 = vector.load %arg3[%c0_3, %c0_4] : memref<1x64xf32, #tpu.memory_space<vmem>>, vector<1x64xf32>
    %4 = vector.broadcast %3 : vector<1x64xf32> to vector<18x64xf32>
    %5 = arith.addf %2, %4 : vector<18x64xf32>
    %cst_5 = arith.constant 0.000000e+00 : f32
    %6 = vector.broadcast %cst_5 : f32 to vector<18x64xf32>
    %7 = arith.maximumf %5, %6 : vector<18x64xf32>
    %8 = arith.truncf %7 : vector<18x64xf32> to vector<18x64xbf16>
    %c0_6 = arith.constant 0 : index
    %c0_7 = arith.constant 0 : index
    %9 = vector.load %arg4[%c0_6, %c0_7] : memref<18x64xbf16, #tpu.memory_space<vmem>>, vector<18x64xbf16>
    tpu.vector_store %arg4[%c0_6, %c0_7], %8 {strides = array<i32>} : memref<18x64xbf16, #tpu.memory_space<vmem>>, vector<18x64xbf16>,
    return
  }
  func.func @transform_0(%arg0: i32) -> (i32, i32) {
    %c0_i32 = arith.constant 0 : i32
    %c0_i32_0 = arith.constant 0 : i32
    return %arg0, %c0_i32 : i32, i32
  }
  func.func @transform_1(%arg0: i32) -> (i32, i32) {
    %c0_i32 = arith.constant 0 : i32
    %c0_i32_0 = arith.constant 0 : i32
    %c0_i32_1 = arith.constant 0 : i32
    return %c0_i32, %c0_i32_0 : i32, i32
  }
  func.func @transform_2(%arg0: i32) -> (i32, i32) {
    %c0_i32 = arith.constant 0 : i32
    %c0_i32_0 = arith.constant 0 : i32
    %c0_i32_1 = arith.constant 0 : i32
    return %c0_i32, %c0_i32_0 : i32, i32
  }
  func.func @transform_3(%arg0: i32) -> (i32, i32) {
    %c0_i32 = arith.constant 0 : i32
    %c0_i32_0 = arith.constant 0 : i32
    return %arg0, %c0_i32 : i32, i32
  }
}

module attributes {stable_mosaic.version = 11 : i64} {
  func.func @_matmul_bias_act_kernel(%arg0: i32, %arg1: memref<2x576xbf16, #tpu.memory_space<vmem>>, %arg2: memref<576x64xbf16, #tpu.memory_space<vmem>>, %arg3: memref<1x64xf32, #tpu.memory_space<vmem>>, %arg4: memref<2x64xbf16, #tpu.memory_space<vmem>>) attributes {dimension_semantics = [#tpu.dimension_semantics<parallel>], iteration_bounds = array<i64: 1>, scalar_prefetch = 0 : i64, scratch_operands = 0 : i64, tpu.core_type = #tpu.core_type<tc>, window_params = [{transform_indices = @transform_0, window_bounds = array<i64: 2, 576>}, {pipeline_mode = #tpu.pipeline_mode<synchronous>, transform_indices = @transform_1, window_bounds = array<i64: 576, 64>}, {pipeline_mode = #tpu.pipeline_mode<synchronous>, transform_indices = @transform_2, window_bounds = array<i64: 1, 64>}, {transform_indices = @transform_3, window_bounds = array<i64: 2, 64>}]} {
    %c0 = arith.constant 0 : index
    %c0_0 = arith.constant 0 : index
    %0 = vector.load %arg1[%c0, %c0_0] : memref<2x576xbf16, #tpu.memory_space<vmem>>, vector<2x576xbf16>
    %c0_1 = arith.constant 0 : index
    %c0_2 = arith.constant 0 : index
    %1 = vector.load %arg2[%c0_1, %c0_2] : memref<576x64xbf16, #tpu.memory_space<vmem>>, vector<576x64xbf16>
    %cst = arith.constant dense<0.000000e+00> : vector<2x64xf32>
    %2 = tpu.matmul %0, %1, %cst {dimension_numbers = #tpu.dot_dimension_numbers<[1], [0], [0], [1], [0, 0, 1, 1], [], []>} : vector<2x576xbf16>, vector<576x64xbf16>, vector<2x64xf32> -> vector<2x64xf32>
    %c0_3 = arith.constant 0 : index
    %c0_4 = arith.constant 0 : index
    %3 = vector.load %arg3[%c0_3, %c0_4] : memref<1x64xf32, #tpu.memory_space<vmem>>, vector<1x64xf32>
    %4 = vector.broadcast %3 : vector<1x64xf32> to vector<2x64xf32>
    %5 = arith.addf %2, %4 : vector<2x64xf32>
    %cst_5 = arith.constant 0.000000e+00 : f32
    %6 = vector.broadcast %cst_5 : f32 to vector<2x64xf32>
    %7 = arith.maximumf %5, %6 : vector<2x64xf32>
    %8 = arith.truncf %7 : vector<2x64xf32> to vector<2x64xbf16>
    %c0_6 = arith.constant 0 : index
    %c0_7 = arith.constant 0 : index
    %9 = vector.load %arg4[%c0_6, %c0_7] : memref<2x64xbf16, #tpu.memory_space<vmem>>, vector<2x64xbf16>
    tpu.vector_store %arg4[%c0_6, %c0_7], %8 {strides = array<i32>} : memref<2x64xbf16, #tpu.memory_space<vmem>>, vector<2x64xbf16>,
    return
  }
  func.func @transform_0(%arg0: i32) -> (i32, i32) {
    %c0_i32 = arith.constant 0 : i32
    %c0_i32_0 = arith.constant 0 : i32
    return %arg0, %c0_i32 : i32, i32
  }
  func.func @transform_1(%arg0: i32) -> (i32, i32) {
    %c0_i32 = arith.constant 0 : i32
    %c0_i32_0 = arith.constant 0 : i32
    %c0_i32_1 = arith.constant 0 : i32
    return %c0_i32, %c0_i32_0 : i32, i32
  }
  func.func @transform_2(%arg0: i32) -> (i32, i32) {
    %c0_i32 = arith.constant 0 : i32
    %c0_i32_0 = arith.constant 0 : i32
    %c0_i32_1 = arith.constant 0 : i32
    return %c0_i32, %c0_i32_0 : i32, i32
  }
  func.func @transform_3(%arg0: i32) -> (i32, i32) {
    %c0_i32 = arith.constant 0 : i32
    %c0_i32_0 = arith.constant 0 : i32
    return %arg0, %c0_i32 : i32, i32
  }
}

module attributes {stable_mosaic.version = 11 : i64} {
  func.func @_matmul_bias_act_kernel(%arg0: i32, %arg1: memref<2x64xbf16, #tpu.memory_space<vmem>>, %arg2: memref<64x512xbf16, #tpu.memory_space<vmem>>, %arg3: memref<1x512xf32, #tpu.memory_space<vmem>>, %arg4: memref<2x512xbf16, #tpu.memory_space<vmem>>) attributes {dimension_semantics = [#tpu.dimension_semantics<parallel>], iteration_bounds = array<i64: 1>, scalar_prefetch = 0 : i64, scratch_operands = 0 : i64, tpu.core_type = #tpu.core_type<tc>, window_params = [{transform_indices = @transform_0, window_bounds = array<i64: 2, 64>}, {pipeline_mode = #tpu.pipeline_mode<synchronous>, transform_indices = @transform_1, window_bounds = array<i64: 64, 512>}, {pipeline_mode = #tpu.pipeline_mode<synchronous>, transform_indices = @transform_2, window_bounds = array<i64: 1, 512>}, {transform_indices = @transform_3, window_bounds = array<i64: 2, 512>}]} {
    %c0 = arith.constant 0 : index
    %c0_0 = arith.constant 0 : index
    %0 = vector.load %arg1[%c0, %c0_0] : memref<2x64xbf16, #tpu.memory_space<vmem>>, vector<2x64xbf16>
    %c0_1 = arith.constant 0 : index
    %c0_2 = arith.constant 0 : index
    %1 = vector.load %arg2[%c0_1, %c0_2] : memref<64x512xbf16, #tpu.memory_space<vmem>>, vector<64x512xbf16>
    %cst = arith.constant dense<0.000000e+00> : vector<2x512xf32>
    %2 = tpu.matmul %0, %1, %cst {dimension_numbers = #tpu.dot_dimension_numbers<[1], [0], [0], [1], [0, 0, 1, 1], [], []>} : vector<2x64xbf16>, vector<64x512xbf16>, vector<2x512xf32> -> vector<2x512xf32>
    %c0_3 = arith.constant 0 : index
    %c0_4 = arith.constant 0 : index
    %3 = vector.load %arg3[%c0_3, %c0_4] : memref<1x512xf32, #tpu.memory_space<vmem>>, vector<1x512xf32>
    %4 = vector.broadcast %3 : vector<1x512xf32> to vector<2x512xf32>
    %5 = arith.addf %2, %4 : vector<2x512xf32>
    %cst_5 = arith.constant 0.000000e+00 : f32
    %6 = vector.broadcast %cst_5 : f32 to vector<2x512xf32>
    %7 = arith.maximumf %5, %6 : vector<2x512xf32>
    %8 = arith.truncf %7 : vector<2x512xf32> to vector<2x512xbf16>
    %c0_6 = arith.constant 0 : index
    %c0_7 = arith.constant 0 : index
    %9 = vector.load %arg4[%c0_6, %c0_7] : memref<2x512xbf16, #tpu.memory_space<vmem>>, vector<2x512xbf16>
    tpu.vector_store %arg4[%c0_6, %c0_7], %8 {strides = array<i32>} : memref<2x512xbf16, #tpu.memory_space<vmem>>, vector<2x512xbf16>,
    return
  }
  func.func @transform_0(%arg0: i32) -> (i32, i32) {
    %c0_i32 = arith.constant 0 : i32
    %c0_i32_0 = arith.constant 0 : i32
    return %arg0, %c0_i32 : i32, i32
  }
  func.func @transform_1(%arg0: i32) -> (i32, i32) {
    %c0_i32 = arith.constant 0 : i32
    %c0_i32_0 = arith.constant 0 : i32
    %c0_i32_1 = arith.constant 0 : i32
    return %c0_i32, %c0_i32_0 : i32, i32
  }
  func.func @transform_2(%arg0: i32) -> (i32, i32) {
    %c0_i32 = arith.constant 0 : i32
    %c0_i32_0 = arith.constant 0 : i32
    %c0_i32_1 = arith.constant 0 : i32
    return %c0_i32, %c0_i32_0 : i32, i32
  }
  func.func @transform_3(%arg0: i32) -> (i32, i32) {
    %c0_i32 = arith.constant 0 : i32
    %c0_i32_0 = arith.constant 0 : i32
    return %arg0, %c0_i32 : i32, i32
  }
}

module attributes {stable_mosaic.version = 11 : i64} {
  func.func @_matmul_bias_softmax_kernel(%arg0: i32, %arg1: memref<2x512xbf16, #tpu.memory_space<vmem>>, %arg2: memref<512x306xbf16, #tpu.memory_space<vmem>>, %arg3: memref<1x306xf32, #tpu.memory_space<vmem>>, %arg4: memref<2x306xf32, #tpu.memory_space<vmem>>) attributes {dimension_semantics = [#tpu.dimension_semantics<parallel>], iteration_bounds = array<i64: 1>, scalar_prefetch = 0 : i64, scratch_operands = 0 : i64, tpu.core_type = #tpu.core_type<tc>, window_params = [{transform_indices = @transform_0, window_bounds = array<i64: 2, 512>}, {pipeline_mode = #tpu.pipeline_mode<synchronous>, transform_indices = @transform_1, window_bounds = array<i64: 512, 306>}, {pipeline_mode = #tpu.pipeline_mode<synchronous>, transform_indices = @transform_2, window_bounds = array<i64: 1, 306>}, {transform_indices = @transform_3, window_bounds = array<i64: 2, 306>}]} {
    %c0 = arith.constant 0 : index
    %c0_0 = arith.constant 0 : index
    %0 = vector.load %arg1[%c0, %c0_0] : memref<2x512xbf16, #tpu.memory_space<vmem>>, vector<2x512xbf16>
    %c0_1 = arith.constant 0 : index
    %c0_2 = arith.constant 0 : index
    %1 = vector.load %arg2[%c0_1, %c0_2] : memref<512x306xbf16, #tpu.memory_space<vmem>>, vector<512x306xbf16>
    %cst = arith.constant dense<0.000000e+00> : vector<2x306xf32>
    %2 = tpu.matmul %0, %1, %cst {dimension_numbers = #tpu.dot_dimension_numbers<[1], [0], [0], [1], [0, 0, 1, 1], [], []>} : vector<2x512xbf16>, vector<512x306xbf16>, vector<2x306xf32> -> vector<2x306xf32>
    %c0_3 = arith.constant 0 : index
    %c0_4 = arith.constant 0 : index
    %3 = vector.load %arg3[%c0_3, %c0_4] : memref<1x306xf32, #tpu.memory_space<vmem>>, vector<1x306xf32>
    %4 = vector.broadcast %3 : vector<1x306xf32> to vector<2x306xf32>
    %5 = arith.addf %2, %4 : vector<2x306xf32>
    %6 = vector.extract_strided_slice %5 {offsets = [0, 0], sizes = [2, 51], strides = [1, 1]} : vector<2x306xf32> to vector<2x51xf32>
    %cst_5 = arith.constant dense<0xFF800000> : vector<2xf32>
    %7 = vector.multi_reduction <maximumf>, %6, %cst_5 [1] : vector<2x51xf32> to vector<2xf32>
    %8 = vector.shape_cast %7 : vector<2xf32> to vector<2x1xf32>
    %9 = vector.broadcast %8 : vector<2x1xf32> to vector<2x51xf32>
    %10 = arith.subf %6, %9 : vector<2x51xf32>
    %11 = math.exp %10 : vector<2x51xf32>
    %cst_6 = arith.constant dense<0.000000e+00> : vector<2xf32>
    %12 = vector.multi_reduction <add>, %11, %cst_6 [1] : vector<2x51xf32> to vector<2xf32>
    %13 = vector.shape_cast %12 : vector<2xf32> to vector<2x1xf32>
    %14 = tpu.reciprocal %13 {approx = true} : vector<2x1xf32> -> vector<2x1xf32>
    %15 = vector.broadcast %14 : vector<2x1xf32> to vector<2x51xf32>
    %16 = arith.mulf %11, %15 : vector<2x51xf32>
    %17 = vector.extract_strided_slice %5 {offsets = [0, 51], sizes = [2, 51], strides = [1, 1]} : vector<2x306xf32> to vector<2x51xf32>
    %cst_7 = arith.constant dense<0xFF800000> : vector<2xf32>
    %18 = vector.multi_reduction <maximumf>, %17, %cst_7 [1] : vector<2x51xf32> to vector<2xf32>
    %19 = vector.shape_cast %18 : vector<2xf32> to vector<2x1xf32>
    %20 = vector.broadcast %19 : vector<2x1xf32> to vector<2x51xf32>
    %21 = arith.subf %17, %20 : vector<2x51xf32>
    %22 = math.exp %21 : vector<2x51xf32>
    %cst_8 = arith.constant dense<0.000000e+00> : vector<2xf32>
    %23 = vector.multi_reduction <add>, %22, %cst_8 [1] : vector<2x51xf32> to vector<2xf32>
    %24 = vector.shape_cast %23 : vector<2xf32> to vector<2x1xf32>
    %25 = tpu.reciprocal %24 {approx = true} : vector<2x1xf32> -> vector<2x1xf32>
    %26 = vector.broadcast %25 : vector<2x1xf32> to vector<2x51xf32>
    %27 = arith.mulf %22, %26 : vector<2x51xf32>
    %28 = vector.extract_strided_slice %5 {offsets = [0, 102], sizes = [2, 51], strides = [1, 1]} : vector<2x306xf32> to vector<2x51xf32>
    %cst_9 = arith.constant dense<0xFF800000> : vector<2xf32>
    %29 = vector.multi_reduction <maximumf>, %28, %cst_9 [1] : vector<2x51xf32> to vector<2xf32>
    %30 = vector.shape_cast %29 : vector<2xf32> to vector<2x1xf32>
    %31 = vector.broadcast %30 : vector<2x1xf32> to vector<2x51xf32>
    %32 = arith.subf %28, %31 : vector<2x51xf32>
    %33 = math.exp %32 : vector<2x51xf32>
    %cst_10 = arith.constant dense<0.000000e+00> : vector<2xf32>
    %34 = vector.multi_reduction <add>, %33, %cst_10 [1] : vector<2x51xf32> to vector<2xf32>
    %35 = vector.shape_cast %34 : vector<2xf32> to vector<2x1xf32>
    %36 = tpu.reciprocal %35 {approx = true} : vector<2x1xf32> -> vector<2x1xf32>
    %37 = vector.broadcast %36 : vector<2x1xf32> to vector<2x51xf32>
    %38 = arith.mulf %33, %37 : vector<2x51xf32>
    %39 = vector.extract_strided_slice %5 {offsets = [0, 153], sizes = [2, 51], strides = [1, 1]} : vector<2x306xf32> to vector<2x51xf32>
    %cst_11 = arith.constant dense<0xFF800000> : vector<2xf32>
    %40 = vector.multi_reduction <maximumf>, %39, %cst_11 [1] : vector<2x51xf32> to vector<2xf32>
    %41 = vector.shape_cast %40 : vector<2xf32> to vector<2x1xf32>
    %42 = vector.broadcast %41 : vector<2x1xf32> to vector<2x51xf32>
    %43 = arith.subf %39, %42 : vector<2x51xf32>
    %44 = math.exp %43 : vector<2x51xf32>
    %cst_12 = arith.constant dense<0.000000e+00> : vector<2xf32>
    %45 = vector.multi_reduction <add>, %44, %cst_12 [1] : vector<2x51xf32> to vector<2xf32>
    %46 = vector.shape_cast %45 : vector<2xf32> to vector<2x1xf32>
    %47 = tpu.reciprocal %46 {approx = true} : vector<2x1xf32> -> vector<2x1xf32>
    %48 = vector.broadcast %47 : vector<2x1xf32> to vector<2x51xf32>
    %49 = arith.mulf %44, %48 : vector<2x51xf32>
    %50 = vector.extract_strided_slice %5 {offsets = [0, 204], sizes = [2, 51], strides = [1, 1]} : vector<2x306xf32> to vector<2x51xf32>
    %cst_13 = arith.constant dense<0xFF800000> : vector<2xf32>
    %51 = vector.multi_reduction <maximumf>, %50, %cst_13 [1] : vector<2x51xf32> to vector<2xf32>
    %52 = vector.shape_cast %51 : vector<2xf32> to vector<2x1xf32>
    %53 = vector.broadcast %52 : vector<2x1xf32> to vector<2x51xf32>
    %54 = arith.subf %50, %53 : vector<2x51xf32>
    %55 = math.exp %54 : vector<2x51xf32>
    %cst_14 = arith.constant dense<0.000000e+00> : vector<2xf32>
    %56 = vector.multi_reduction <add>, %55, %cst_14 [1] : vector<2x51xf32> to vector<2xf32>
    %57 = vector.shape_cast %56 : vector<2xf32> to vector<2x1xf32>
    %58 = tpu.reciprocal %57 {approx = true} : vector<2x1xf32> -> vector<2x1xf32>
    %59 = vector.broadcast %58 : vector<2x1xf32> to vector<2x51xf32>
    %60 = arith.mulf %55, %59 : vector<2x51xf32>
    %61 = vector.extract_strided_slice %5 {offsets = [0, 255], sizes = [2, 51], strides = [1, 1]} : vector<2x306xf32> to vector<2x51xf32>
    %cst_15 = arith.constant dense<0xFF800000> : vector<2xf32>
    %62 = vector.multi_reduction <maximumf>, %61, %cst_15 [1] : vector<2x51xf32> to vector<2xf32>
    %63 = vector.shape_cast %62 : vector<2xf32> to vector<2x1xf32>
    %64 = vector.broadcast %63 : vector<2x1xf32> to vector<2x51xf32>
    %65 = arith.subf %61, %64 : vector<2x51xf32>
    %66 = math.exp %65 : vector<2x51xf32>
    %cst_16 = arith.constant dense<0.000000e+00> : vector<2xf32>
    %67 = vector.multi_reduction <add>, %66, %cst_16 [1] : vector<2x51xf32> to vector<2xf32>
    %68 = vector.shape_cast %67 : vector<2xf32> to vector<2x1xf32>
    %69 = tpu.reciprocal %68 {approx = true} : vector<2x1xf32> -> vector<2x1xf32>
    %70 = vector.broadcast %69 : vector<2x1xf32> to vector<2x51xf32>
    %71 = arith.mulf %66, %70 : vector<2x51xf32>
    %72 = tpu.concatenate %16, %27, %38, %49, %60, %71 in 1 : vector<2x51xf32>, vector<2x51xf32>, vector<2x51xf32>, vector<2x51xf32>, vector<2x51xf32>, vector<2x51xf32> -> vector<2x306xf32>
    %c0_17 = arith.constant 0 : index
    %c0_18 = arith.constant 0 : index
    %73 = vector.load %arg4[%c0_17, %c0_18] : memref<2x306xf32, #tpu.memory_space<vmem>>, vector<2x306xf32>
    tpu.vector_store %arg4[%c0_17, %c0_18], %72 {strides = array<i32>} : memref<2x306xf32, #tpu.memory_space<vmem>>, vector<2x306xf32>,
    return
  }
  func.func @transform_0(%arg0: i32) -> (i32, i32) {
    %c0_i32 = arith.constant 0 : i32
    %c0_i32_0 = arith.constant 0 : i32
    return %arg0, %c0_i32 : i32, i32
  }
  func.func @transform_1(%arg0: i32) -> (i32, i32) {
    %c0_i32 = arith.constant 0 : i32
    %c0_i32_0 = arith.constant 0 : i32
    %c0_i32_1 = arith.constant 0 : i32
    return %c0_i32, %c0_i32_0 : i32, i32
  }
  func.func @transform_2(%arg0: i32) -> (i32, i32) {
    %c0_i32 = arith.constant 0 : i32
    %c0_i32_0 = arith.constant 0 : i32
    %c0_i32_1 = arith.constant 0 : i32
    return %c0_i32, %c0_i32_0 : i32, i32
  }
  func.func @transform_3(%arg0: i32) -> (i32, i32) {
    %c0_i32 = arith.constant 0 : i32
    %c0_i32_0 = arith.constant 0 : i32
    return %arg0, %c0_i32 : i32, i32
  }
}

</mosaic_0001>

<bundles_post_ra>
// kernel: c51_forward.5
= control target key start
LH: loop header
LB: loop body
LE: loop exit
PB: predicated region body
PF: predicated region fallthrough
CT: control target
= control target key end

     0   :  { %vm423_vm0 = vcmask 257024   ;;  %s830_s1 = inlined_call_operand.vmem [shape: bf16[256,32], index: 1, kind: input, shape index: {}]   ;;  %s831_s0 = inlined_call_operand.vmem [shape: bf16[128,256], index: 0, kind: input, shape index: {}]   ;;  %s832_s2 = inlined_call_operand.vmem [shape: f32[1,32], index: 2, kind: input, shape index: {}]   ;;  %s833_s3 = inlined_call_operand.vmem [shape: bf16[128,32], index: 3, kind: output, shape index: {}]  }
   0x1   :  { %v589_v0 = vld [vmem:[%s830_s1 + $0x40] sm:$0xff]   ;;  %v591_v2 = vld [vmem:[%s830_s1 + $0x48] sm:$0xff]   ;;  %v593_v4 = vld [vmem:[%s830_s1 + $0x50] sm:$0xff]  }
   0x2   :  { %v590_v1 = vld [vmem:[%s830_s1] sm:$0xff]   ;;  %509 = vmatprep.subr.bf16.mxu0 %v589_v0  ;;  %573 = vmatprep.subr.bf16.mxu1 %v589_v0  ;;  %v592_v3 = vld [vmem:[%s830_s1 + $0x8] sm:$0xff]   ;;  %v594_v5 = vld [vmem:[%s830_s1 + $0x10] sm:$0xff]  }
   0x3   :  { %510 = vmatpush3.bf16.msra.mxu0 %v590_v1  ;;  %581 = vmatpush3.bf16.msra.mxu1 %v590_v1  ;;  %v595_v6 = vld [vmem:[%s830_s1 + $0x58] sm:$0xff]   ;;  %v597_v8 = vld [vmem:[%s830_s1 + $0x60] sm:$0xff]   ;;  %v599_v10 = vld [vmem:[%s830_s1 + $0x68] sm:$0xff]  }
   0x4   :  { %511 = vmatprep.subr.bf16.mxu0 %v591_v2  ;;  %574 = vmatprep.subr.bf16.mxu1 %v591_v2  ;;  %v596_v7 = vld [vmem:[%s830_s1 + $0x18] sm:$0xff]   ;;  %v598_v9 = vld [vmem:[%s830_s1 + $0x20] sm:$0xff]   ;;  %v600_v13 = vld [vmem:[%s830_s1 + $0x28] sm:$0xff]  }
   0x5   :  { %v607_v11 = vld [vmem:[%s831_s0 + $0x4] ss:$8 sps:$4 sm:$0xff]   ;;  %v601_v14 = vld [vmem:[%s830_s1 + $0x70] sm:$0xff]   ;;  %v603_v16 = vld [vmem:[%s830_s1 + $0x78] sm:$0xff]  }
   0x6   :  { %v610_v12 = vld [vmem:[%s831_s0 + $0x44] ss:$8 sps:$4 sm:$0xff]   ;;  %278 = vmatprep.mubr.bf16.mxu0 %v607_v11  ;;  %v602_v15 = vld [vmem:[%s830_s1 + $0x30] sm:$0xff]   ;;  %v604_v17 = vld [vmem:[%s830_s1 + $0x38] sm:$0xff]  }
   0x7   :  { %512 = vmatpush3.bf16.msra.mxu0 %v592_v3  ;;  %582 = vmatpush3.bf16.msra.mxu1 %v592_v3  ;;  %v605_v18 = vld [vmem:[%s831_s0] ss:$8 sps:$4 sm:$0xff]   ;;  %v611_v20 = vld [vmem:[%s831_s0 + $0x14] ss:$8 sps:$4 sm:$0xff]   ;;  %v615_v22 = vld [vmem:[%s831_s0 + $0x10] ss:$8 sps:$4 sm:$0xff]  }
   0x8   :  { %513 = vmatprep.subr.bf16.mxu0 %v593_v4  ;;  %575 = vmatprep.subr.bf16.mxu1 %v593_v4  ;;  %v608_v19 = vld [vmem:[%s831_s0 + $0x40] ss:$8 sps:$4 sm:$0xff]   ;;  %v613_v21 = vld [vmem:[%s831_s0 + $0x54] ss:$8 sps:$4 sm:$0xff]   ;;  %v616_v23 = vld [vmem:[%s831_s0 + $0x50] ss:$8 sps:$4 sm:$0xff]  }
   0x9   :  { %310 = vmatprep.mubr.bf16.mxu1 %v610_v12  ;;  %v617_v24 = vld [vmem:[%s831_s0 + $0x24] ss:$8 sps:$4 sm:$0xff]   ;;  %v621_v26 = vld [vmem:[%s831_s0 + $0x20] ss:$8 sps:$4 sm:$0xff]   ;;  %v623_v28 = vld [vmem:[%s831_s0 + $0x34] ss:$8 sps:$4 sm:$0xff]  }
   0xa   :  { %v619_v25 = vld [vmem:[%s831_s0 + $0x64] ss:$8 sps:$4 sm:$0xff]   ;;  %v622_v27 = vld [vmem:[%s831_s0 + $0x60] ss:$8 sps:$4 sm:$0xff]   ;;  %v625_v29 = vld [vmem:[%s831_s0 + $0x74] ss:$8 sps:$4 sm:$0xff]  }
   0xb   :  { %514 = vmatpush3.bf16.msra.mxu0 %v594_v5  ;;  %583 = vmatpush3.bf16.msra.mxu1 %v594_v5  ;;  %v627_v30 = vld [vmem:[%s831_s0 + $0x30] ss:$8 sps:$4 sm:$0xff]   ;;  %v748_v34 = vld [vmem:[%s832_s2] ss:$0 sm:$0xff] }
   0xc   :  { %515 = vmatprep.subr.bf16.mxu0 %v595_v6  ;;  %576 = vmatprep.subr.bf16.mxu1 %v595_v6  ;;  %v628_v31 = vld [vmem:[%s831_s0 + $0x70] ss:$8 sps:$4 sm:$0xff]  }
   0xf   :  { %516 = vmatpush3.bf16.msra.mxu0 %v596_v7  ;;  %584 = vmatpush3.bf16.msra.mxu1 %v596_v7 }
  0x10   :  { %517 = vmatprep.subr.bf16.mxu0 %v597_v8  ;;  %577 = vmatprep.subr.bf16.mxu1 %v597_v8 }
  0x13   :  { %518 = vmatpush3.bf16.msra.mxu0 %v598_v9  ;;  %585 = vmatpush3.bf16.msra.mxu1 %v598_v9 }
  0x14   :  { %519 = vmatprep.subr.bf16.mxu0 %v599_v10  ;;  %578 = vmatprep.subr.bf16.mxu1 %v599_v10 }
  0x17   :  { %520 = vmatpush3.bf16.msra.mxu0 %v600_v13  ;;  %586 = vmatpush3.bf16.msra.mxu1 %v600_v13 }
  0x18   :  { %521 = vmatprep.subr.bf16.mxu0 %v601_v14  ;;  %579 = vmatprep.subr.bf16.mxu1 %v601_v14 }
  0x1b   :  { %522 = vmatpush3.bf16.msra.mxu0 %v602_v15  ;;  %587 = vmatpush3.bf16.msra.mxu1 %v602_v15 }
  0x1c   :  { %523 = vmatprep.subr.bf16.mxu0 %v603_v16  ;;  %580 = vmatprep.subr.bf16.mxu1 %v603_v16 }
  0x1f   :  { %524 = vmatpush3.bf16.msra.mxu0 %v604_v17  ;;  %588 = vmatpush3.bf16.msra.mxu1 %v604_v17 }
  0x22   :  { %279 = vmatmul.mubr.bf16.vlgmr.msra.gmra.mrb[0].mxu0 %v605_v18  ;;  %311 = vmatmul.mubr.bf16.vlgmr.msra.gmra.mrb[0].mxu1 %v608_v19 }
  0x23   :  { %286 = vmatprep.mubr.bf16.mxu0 %v611_v20  ;;  %318 = vmatprep.mubr.bf16.mxu1 %v613_v21 }
  0x2a   :  { %287 = vmatmul.mubr.bf16.gmra.mrb[4].mxu0 %v615_v22  ;;  %319 = vmatmul.mubr.bf16.gmra.mrb[4].mxu1 %v616_v23 }
  0x2b   :  { %294 = vmatprep.mubr.bf16.mxu0 %v617_v24  ;;  %326 = vmatprep.mubr.bf16.mxu1 %v619_v25 }
  0x32   :  { %295 = vmatmul.mubr.bf16.gmra.mrb[8].mxu0 %v621_v26  ;;  %327 = vmatmul.mubr.bf16.gmra.mrb[8].mxu1 %v622_v27 }
  0x33   :  { %302 = vmatprep.mubr.bf16.mxu0 %v623_v28  ;;  %334 = vmatprep.mubr.bf16.mxu1 %v625_v29 }
  0x3a   :  { %303 = vmatmul.mubr.bf16.gmra.mrb[12].mxu0 %v627_v30  ;;  %335 = vmatmul.mubr.bf16.gmra.mrb[12].mxu1 %v628_v31 }
  0xf5   :  { %v525_v32 = vpop.f32.mrb[0].mxu0  ;;  %v549_v33 = vpop.f32.mrb[0].mxu1 }
  0xf6   :  { %v526_v35 = vpop.f32.mrb[1].mxu0  ;;  %v550_v36 = vpop.f32.mrb[1].mxu1 }
  0xf7   :  { %v527_v37 = vadd.f32 %v526_v35, %v525_v32  ;;  %v551_v38 = vadd.f32 %v550_v36, %v549_v33  ;;  %v528_v39 = vpop.f32.mrb[2].mxu0  ;;  %v552_v40 = vpop.f32.mrb[2].mxu1 }
  0xf8   :  { %v529_v41 = vpop.f32.mrb[3].mxu0  ;;  %v553_v42 = vpop.f32.mrb[3].mxu1 }
  0xf9   :  { %v281_v43 = vadd.f32 %v527_v37, %v748_v34  ;;  %v313_v44 = vadd.f32 %v551_v38, %v748_v34  ;;  %v530_v45 = vadd.f32 %v529_v41, %v528_v39  ;;  %v554_v46 = vadd.f32 %v553_v42, %v552_v40 }
  0xfb   :  { %v343_v47 = vmax.f32 %v281_v43, 0.0  ;;  %v351_v48 = vmax.f32 %v313_v44, 0.0  ;;  %v284_v49 = vadd.f32 %v530_v45, %v748_v34  ;;  %v316_v50 = vadd.f32 %v554_v46, %v748_v34 }
  0xfd   :  { %v493_v51 = vpack.c.bf16 %v343_v47, %v343_v47  ;;  %v501_v52 = vpack.c.bf16 %v351_v48, %v351_v48  ;;  %v344_v53 = vmax.f32 %v284_v49, 0.0  ;;  %v352_v54 = vmax.f32 %v316_v50, 0.0  ;;  %v531_v55 = vpop.f32.mrb[4].mxu0  ;;  %v555_v56 = vpop.f32.mrb[4].mxu1 }
  0xfe   :  { %v532_v57 = vpop.f32.mrb[5].mxu0  ;;  %v556_v58 = vpop.f32.mrb[5].mxu1 }
  0xff   :  { %424 = vst.msk [vmem:[%s833_s3] sm:$0xf] %vm423_vm0, %v493_v51  ;;  %432 = vst.msk [vmem:[%s833_s3 + $0x20] sm:$0xf] %vm423_vm0, %v501_v52  ;;  %v494_v59 = vpack.c.bf16 %v344_v53, %v344_v53  ;;  %v502_v60 = vpack.c.bf16 %v352_v54, %v352_v54  ;;  %v533_v61 = vadd.f32 %v532_v57, %v531_v55  ;;  %v534_v63 = vpop.f32.mrb[6].mxu0  ;;  %v558_v0 = vpop.f32.mrb[6].mxu1 }
 0x100   :  { %v557_v62 = vadd.f32 %v556_v58, %v555_v56  ;;  %v535_v1 = vpop.f32.mrb[7].mxu0  ;;  %v559_v2 = vpop.f32.mrb[7].mxu1 }
 0x101   :  { %425 = vst.msk [vmem:[%s833_s3 + $0x4] sm:$0xf] %vm423_vm0, %v494_v59  ;;  %433 = vst.msk [vmem:[%s833_s3 + $0x24] sm:$0xf] %vm423_vm0, %v502_v60  ;;  %v289_v3 = vadd.f32 %v533_v61, %v748_v34  ;;  %v536_v5 = vadd.f32 %v535_v1, %v534_v63  ;;  %v560_v6 = vadd.f32 %v559_v2, %v558_v0 }
 0x102   :  { %v321_v4 = vadd.f32 %v557_v62, %v748_v34 }
 0x103   :  { %v345_v7 = vmax.f32 %v289_v3, 0.0  ;;  %v292_v9 = vadd.f32 %v536_v5, %v748_v34  ;;  %v324_v10 = vadd.f32 %v560_v6, %v748_v34 }
 0x104   :  { %v353_v8 = vmax.f32 %v321_v4, 0.0 }
 0x105   :  { %v495_v11 = vpack.c.bf16 %v345_v7, %v345_v7  ;;  %v346_v13 = vmax.f32 %v292_v9, 0.0  ;;  %v354_v14 = vmax.f32 %v324_v10, 0.0  ;;  %v537_v15 = vpop.f32.mrb[8].mxu0  ;;  %v561_v16 = vpop.f32.mrb[8].mxu1 }
 0x106   :  { %v503_v12 = vpack.c.bf16 %v353_v8, %v353_v8  ;;  %v538_v17 = vpop.f32.mrb[9].mxu0  ;;  %v562_v18 = vpop.f32.mrb[9].mxu1 }
 0x107   :  { %426 = vst.msk [vmem:[%s833_s3 + $0x8] sm:$0xf] %vm423_vm0, %v495_v11  ;;  %v496_v19 = vpack.c.bf16 %v346_v13, %v346_v13  ;;  %v504_v20 = vpack.c.bf16 %v354_v14, %v354_v14  ;;  %v539_v21 = vadd.f32 %v538_v17, %v537_v15  ;;  %v563_v22 = vadd.f32 %v562_v18, %v561_v16  ;;  %v540_v23 = vpop.f32.mrb[10].mxu0  ;;  %v564_v24 = vpop.f32.mrb[10].mxu1 }
 0x108   :  { %434 = vst.msk [vmem:[%s833_s3 + $0x28] sm:$0xf] %vm423_vm0, %v503_v12  ;;  %v541_v25 = vpop.f32.mrb[11].mxu0  ;;  %v565_v26 = vpop.f32.mrb[11].mxu1 }
 0x109   :  { %427 = vst.msk [vmem:[%s833_s3 + $0xc] sm:$0xf] %vm423_vm0, %v496_v19  ;;  %435 = vst.msk [vmem:[%s833_s3 + $0x2c] sm:$0xf] %vm423_vm0, %v504_v20  ;;  %v297_v27 = vadd.f32 %v539_v21, %v748_v34  ;;  %v329_v28 = vadd.f32 %v563_v22, %v748_v34  ;;  %v542_v29 = vadd.f32 %v541_v25, %v540_v23 }
 0x10a   :  { %v566_v30 = vadd.f32 %v565_v26, %v564_v24 }
 0x10b   :  { %v347_v31 = vmax.f32 %v297_v27, 0.0  ;;  %v355_v32 = vmax.f32 %v329_v28, 0.0  ;;  %v300_v33 = vadd.f32 %v542_v29, %v748_v34 }
 0x10c   :  { %v332_v35 = vadd.f32 %v566_v30, %v748_v34 }
 0x10d   :  { %v497_v36 = vpack.c.bf16 %v347_v31, %v347_v31  ;;  %v505_v37 = vpack.c.bf16 %v355_v32, %v355_v32  ;;  %v348_v38 = vmax.f32 %v300_v33, 0.0  ;;  %v543_v40 = vpop.f32.mrb[12].mxu0  ;;  %v567_v41 = vpop.f32.mrb[12].mxu1 }
 0x10e   :  { %v356_v39 = vmax.f32 %v332_v35, 0.0  ;;  %v544_v42 = vpop.f32.mrb[13].mxu0  ;;  %v568_v43 = vpop.f32.mrb[13].mxu1 }
 0x10f   :  { %428 = vst.msk [vmem:[%s833_s3 + $0x10] sm:$0xf] %vm423_vm0, %v497_v36  ;;  %436 = vst.msk [vmem:[%s833_s3 + $0x30] sm:$0xf] %vm423_vm0, %v505_v37  ;;  %v498_v44 = vpack.c.bf16 %v348_v38, %v348_v38  ;;  %v545_v46 = vadd.f32 %v544_v42, %v543_v40  ;;  %v569_v47 = vadd.f32 %v568_v43, %v567_v41  ;;  %v546_v48 = vpop.f32.mrb[14].mxu0  ;;  %v570_v49 = vpop.f32.mrb[14].mxu1 }
 0x110   :  { %v506_v45 = vpack.c.bf16 %v356_v39, %v356_v39  ;;  %v547_v50 = vpop.f32.mrb[15].mxu0  ;;  %v571_v51 = vpop.f32.mrb[15].mxu1 }
 0x111   :  { %429 = vst.msk [vmem:[%s833_s3 + $0x14] sm:$0xf] %vm423_vm0, %v498_v44  ;;  %v305_v52 = vadd.f32 %v545_v46, %v748_v34  ;;  %v337_v53 = vadd.f32 %v569_v47, %v748_v34  ;;  %v548_v54 = vadd.f32 %v547_v50, %v546_v48  ;;  %v572_v55 = vadd.f32 %v571_v51, %v570_v49 }
 0x112   :  { %437 = vst.msk [vmem:[%s833_s3 + $0x34] sm:$0xf] %vm423_vm0, %v506_v45 }
 0x113   :  { %v349_v56 = vmax.f32 %v305_v52, 0.0  ;;  %v357_v57 = vmax.f32 %v337_v53, 0.0  ;;  %v308_v58 = vadd.f32 %v548_v54, %v748_v34  ;;  %v340_v59 = vadd.f32 %v572_v55, %v748_v34 }
 0x115   :  { %v499_v60 = vpack.c.bf16 %v349_v56, %v349_v56  ;;  %v507_v61 = vpack.c.bf16 %v357_v57, %v357_v57  ;;  %v350_v62 = vmax.f32 %v308_v58, 0.0  ;;  %v358_v63 = vmax.f32 %v340_v59, 0.0 }
 0x117   :  { %430 = vst.msk [vmem:[%s833_s3 + $0x18] sm:$0xf] %vm423_vm0, %v499_v60  ;;  %438 = vst.msk [vmem:[%s833_s3 + $0x38] sm:$0xf] %vm423_vm0, %v507_v61  ;;  %v500_v0 = vpack.c.bf16 %v350_v62, %v350_v62  ;;  %v508_v1 = vpack.c.bf16 %v358_v63, %v358_v63 }
 0x119   :  { %431 = vst.msk [vmem:[%s833_s3 + $0x1c] sm:$0xf] %vm423_vm0, %v500_v0  ;;  %439 = vst.msk [vmem:[%s833_s3 + $0x3c] sm:$0xf] %vm423_vm0, %v508_v1 }

// kernel: c51_forward.6
= control target key start
LH: loop header
LB: loop body
LE: loop exit
PB: predicated region body
PF: predicated region fallthrough
CT: control target
= control target key end

     0   :  { %vm430_vm0 = vcmask 519168   ;;  %vm433_vm1 = vcmask 516096   ;;  %s730_s1 = inlined_call_operand.vmem [shape: bf16[512,64], index: 1, kind: input, shape index: {}]   ;;  %s731_s0 = inlined_call_operand.vmem [shape: bf16[18,512], index: 0, kind: input, shape index: {}]   ;;  %s732_s2 = inlined_call_operand.vmem [shape: f32[1,64], index: 2, kind: input, shape index: {}]   ;;  %s733_s3 = inlined_call_operand.vmem [shape: bf16[18,64], index: 3, kind: output, shape index: {}]  }
   0x1   :  { %v542_v0 = vld [vmem:[%s730_s1 + $0x40] sm:$0xff]   ;;  %v546_v4 = vld [vmem:[%s730_s1 + $0x48] sm:$0xff]   ;;  %v550_v8 = vld [vmem:[%s730_s1 + $0x50] sm:$0xff]  }
   0x2   :  { %v543_v1 = vld [vmem:[%s730_s1 + $0xc0] sm:$0xff]   ;;  %486 = vmatprep.subr.bf16.mxu0 %v542_v0  ;;  %v547_v5 = vld [vmem:[%s730_s1 + $0xc8] sm:$0xff]   ;;  %v551_v9 = vld [vmem:[%s730_s1 + $0xd0] sm:$0xff]  }
   0x3   :  { %v544_v2 = vld [vmem:[%s730_s1] sm:$0xff]   ;;  %514 = vmatprep.subr.bf16.mxu1 %v543_v1  ;;  %v548_v6 = vld [vmem:[%s730_s1 + $0x8] sm:$0xff]   ;;  %v552_v10 = vld [vmem:[%s730_s1 + $0x10] sm:$0xff]  }
   0x4   :  { %v545_v3 = vld [vmem:[%s730_s1 + $0x80] sm:$0xff]   ;;  %487 = vmatpush3.bf16.msra.mxu0 %v544_v2  ;;  %v549_v7 = vld [vmem:[%s730_s1 + $0x88] sm:$0xff]   ;;  %v553_v11 = vld [vmem:[%s730_s1 + $0x90] sm:$0xff]  }
   0x5   :  { %515 = vmatpush3.bf16.msra.mxu1 %v545_v3  ;;  %488 = vmatprep.subr.bf16.mxu0 %v546_v4  ;;  %v554_v12 = vld [vmem:[%s730_s1 + $0x58] sm:$0xff]   ;;  %v558_v16 = vld [vmem:[%s730_s1 + $0x60] sm:$0xff]   ;;  %v562_v20 = vld [vmem:[%s730_s1 + $0x68] sm:$0xff]  }
   0x6   :  { %516 = vmatprep.subr.bf16.mxu1 %v547_v5  ;;  %v555_v13 = vld [vmem:[%s730_s1 + $0xd8] sm:$0xff]   ;;  %v559_v17 = vld [vmem:[%s730_s1 + $0xe0] sm:$0xff]   ;;  %v563_v21 = vld [vmem:[%s730_s1 + $0xe8] sm:$0xff]  }
   0x7   :  { %v556_v14 = vld [vmem:[%s730_s1 + $0x18] sm:$0xff]   ;;  %v560_v18 = vld [vmem:[%s730_s1 + $0x20] sm:$0xff]   ;;  %v564_v22 = vld [vmem:[%s730_s1 + $0x28] sm:$0xff]  }
   0x8   :  { %489 = vmatpush3.bf16.msra.mxu0 %v548_v6  ;;  %v557_v15 = vld [vmem:[%s730_s1 + $0x98] sm:$0xff]   ;;  %v561_v19 = vld [vmem:[%s730_s1 + $0xa0] sm:$0xff]   ;;  %v565_v23 = vld [vmem:[%s730_s1 + $0xa8] sm:$0xff]  }
   0x9   :  { %517 = vmatpush3.bf16.msra.mxu1 %v549_v7  ;;  %490 = vmatprep.subr.bf16.mxu0 %v550_v8  ;;  %v566_v24 = vld [vmem:[%s730_s1 + $0x70] sm:$0xff]   ;;  %v570_v28 = vld [vmem:[%s730_s1 + $0x78] sm:$0xff]   ;;  %v19_v36 = vld [vmem:[%s731_s0 + $0x20] sm:$0x11] }
   0xa   :  { %518 = vmatprep.subr.bf16.mxu1 %v551_v9  ;;  %v567_v25 = vld [vmem:[%s730_s1 + $0xf0] sm:$0xff]   ;;  %v571_v29 = vld [vmem:[%s730_s1 + $0xf8] sm:$0xff]   ;;  %v445_v37 = vcombine.high %v19_v36, %v19_v36  ;;  %v20_v38 = vld [vmem:[%s731_s0 + $0x28] sm:$0x11]  ;;  %v444_v40 = vcombine.low %v19_v36, %v19_v36 }
   0xb   :  { %v568_v26 = vld [vmem:[%s730_s1 + $0x30] sm:$0xff]   ;;  %v572_v30 = vld [vmem:[%s730_s1 + $0x38] sm:$0xff]   ;;  %v447_v39 = vcombine.high %v20_v38, %v20_v38  ;;  %v446_v41 = vcombine.low %v20_v38, %v20_v38  ;;  %v439_v44 = vld [vmem:[%s732_s2] ss:$0 sm:$0xff] }
   0xc   :  { %491 = vmatpush3.bf16.msra.mxu0 %v552_v10  ;;  %v569_v27 = vld [vmem:[%s730_s1 + $0xb0] sm:$0xff]   ;;  %v573_v31 = vld [vmem:[%s730_s1 + $0xb8] sm:$0xff]  }
   0xd   :  { %519 = vmatpush3.bf16.msra.mxu1 %v553_v11  ;;  %492 = vmatprep.subr.bf16.mxu0 %v554_v12  ;;  %v574_v32 = vld [vmem:[%s731_s0] ss:$16 sps:$4 sm:$0xff]   ;;  %v576_v33 = vld [vmem:[%s731_s0 + $0x4] ss:$16 sps:$4 sm:$0xff]   ;;  %v577_v34 = vld [vmem:[%s731_s0 + $0x8] ss:$16 sps:$4 sm:$0xff]  }
   0xe   :  { %520 = vmatprep.subr.bf16.mxu1 %v555_v13  ;;  %v579_v35 = vld [vmem:[%s731_s0 + $0xc] ss:$16 sps:$4 sm:$0xff]   ;;  %350 = vmatprep.mubr.bf16.mxu0 %v576_v33 }
   0xf   :  { %398 = vmatprep.mubr.bf16.mxu1 %v579_v35 }
  0x10   :  { %493 = vmatpush3.bf16.msra.mxu0 %v556_v14 }
  0x11   :  { %521 = vmatpush3.bf16.msra.mxu1 %v557_v15  ;;  %494 = vmatprep.subr.bf16.mxu0 %v558_v16 }
  0x12   :  { %522 = vmatprep.subr.bf16.mxu1 %v559_v17 }
  0x14   :  { %495 = vmatpush3.bf16.msra.mxu0 %v560_v18 }
  0x15   :  { %523 = vmatpush3.bf16.msra.mxu1 %v561_v19  ;;  %496 = vmatprep.subr.bf16.mxu0 %v562_v20 }
  0x16   :  { %524 = vmatprep.subr.bf16.mxu1 %v563_v21 }
  0x18   :  { %497 = vmatpush3.bf16.msra.mxu0 %v564_v22 }
  0x19   :  { %525 = vmatpush3.bf16.msra.mxu1 %v565_v23  ;;  %498 = vmatprep.subr.bf16.mxu0 %v566_v24 }
  0x1a   :  { %526 = vmatprep.subr.bf16.mxu1 %v567_v25 }
  0x1c   :  { %499 = vmatpush3.bf16.msra.mxu0 %v568_v26 }
  0x1d   :  { %527 = vmatpush3.bf16.msra.mxu1 %v569_v27  ;;  %500 = vmatprep.subr.bf16.mxu0 %v570_v28 }
  0x1e   :  { %528 = vmatprep.subr.bf16.mxu1 %v571_v29 }
  0x20   :  { %501 = vmatpush3.bf16.msra.mxu0 %v572_v30 }
  0x21   :  { %529 = vmatpush3.bf16.msra.mxu1 %v573_v31 }
  0x23   :  { %351 = vmatmul.mubr.bf16.vlgmr.msra.gmra.mrb[0].mxu0 %v574_v32 }
  0x24   :  { %399 = vmatmul.mubr.bf16.vlgmr.msra.gmra.mrb[0].mxu1 %v577_v34  ;;  %358 = vmatprep.mubr.bf16.mxu0 %v445_v37 }
  0x25   :  { %406 = vmatprep.mubr.bf16.mxu1 %v447_v39 }
  0x2b   :  { %359 = vmatmul.mubr.bf16.gmra.mrb[4].mxu0 %v444_v40 }
  0x2c   :  { %407 = vmatmul.mubr.bf16.gmra.mrb[4].mxu1 %v446_v41 }
  0xf6   :  { %v502_v42 = vpop.f32.mrb[0].mxu0 }
  0xf7   :  { %v530_v43 = vpop.f32.mrb[0].mxu1  ;;  %v503_v45 = vpop.f32.mrb[1].mxu0 }
  0xf8   :  { %v504_v46 = vadd.f32 %v503_v45, %v502_v42  ;;  %v531_v47 = vpop.f32.mrb[1].mxu1  ;;  %v505_v48 = vpop.f32.mrb[2].mxu0 }
  0xf9   :  { %v532_v49 = vadd.f32 %v531_v47, %v530_v43  ;;  %v533_v50 = vpop.f32.mrb[2].mxu1  ;;  %v506_v51 = vpop.f32.mrb[3].mxu0 }
  0xfa   :  { %v353_v52 = vadd.f32 %v504_v46, %v439_v44  ;;  %v507_v53 = vadd.f32 %v506_v51, %v505_v48  ;;  %v534_v54 = vpop.f32.mrb[3].mxu1 }
  0xfb   :  { %v535_v55 = vadd.f32 %v534_v54, %v533_v50 }
  0xfc   :  { %v401_v56 = vadd.f32 %v532_v49, %v353_v52  ;;  %v356_v57 = vadd.f32 %v507_v53, %v439_v44 }
  0xfe   :  { %v414_v58 = vmax.f32 %v401_v56, 0.0  ;;  %v404_v59 = vadd.f32 %v535_v55, %v356_v57  ;;  %v508_v60 = vpop.f32.mrb[4].mxu0 }
  0xff   :  { %v536_v61 = vpop.f32.mrb[4].mxu1  ;;  %v509_v62 = vpop.f32.mrb[5].mxu0 }
 0x100   :  { %v483_v63 = vpack.c.bf16 %v414_v58, %v414_v58  ;;  %v415_v0 = vmax.f32 %v404_v59, 0.0  ;;  %v510_v1 = vadd.f32 %v509_v62, %v508_v60  ;;  %v537_v2 = vpop.f32.mrb[5].mxu1  ;;  %v511_v3 = vpop.f32.mrb[6].mxu0 }
 0x101   :  { %v538_v4 = vadd.f32 %v537_v2, %v536_v61  ;;  %v539_v5 = vpop.f32.mrb[6].mxu1  ;;  %v512_v6 = vpop.f32.mrb[7].mxu0 }
 0x102   :  { %431 = vst.msk [vmem:[%s733_s3] sm:$0xf] %vm430_vm0, %v483_v63  ;;  %v484_v7 = vpack.c.bf16 %v415_v0, %v415_v0  ;;  %v361_v8 = vadd.f32 %v510_v1, %v439_v44  ;;  %v540_v9 = vpop.f32.mrb[7].mxu1 }
 0x104   :  { %432 = vst.msk [vmem:[%s733_s3 + $0x4] sm:$0xf] %vm430_vm0, %v484_v7  ;;  %v409_v10 = vadd.f32 %v538_v4, %v361_v8 }
 0x106   :  { %v416_v11 = vmax.f32 %v409_v10, 0.0 }
 0x108   :  { %v485_v12 = vpack.c.bf16 %v416_v11, %v416_v11 }
 0x10a   :  { %434 = vst.msk [vmem:[%s733_s3 + $0x8] sm:$0x1] %vm433_vm1, %v485_v12 }

// kernel: c51_forward.8
= control target key start
LH: loop header
LB: loop body
LE: loop exit
PB: predicated region body
PF: predicated region fallthrough
CT: control target
= control target key end

     0   :  { %v309_v1 = vmov 0   ;;  %vm134_vm0 = vcmask 523264   ;;  %v34_v18 = vlaneseq  ;;  %v310_v25 = vmov 1966171168   ;;  %s388_s1 = inlined_call_operand.vmem [shape: bf16[64,512], index: 1, kind: input, shape index: {}]   ;;  %s389_s0 = inlined_call_operand.vmem [shape: bf16[2,64], index: 0, kind: input, shape index: {}]   ;;  %s390_s2 = inlined_call_operand.vmem [shape: f32[1,512], index: 2, kind: input, shape index: {}]   ;;  %s391_s3 = inlined_call_operand.vmem [shape: bf16[2,512], index: 3, kind: output, shape index: {}]  }
   0x1   :  { %v285_v0 = vld [vmem:[%s388_s1 + $0x4] ss:$16 sps:$4 sm:$0xff]   ;;  %170 = vmatprep.mubr.bf16.mxu0 %v309_v1  ;;  %211 = vmatprep.mubr.bf16.mxu1 %v309_v1  ;;  %v287_v2 = vld [vmem:[%s388_s1 + $0xc] ss:$16 sps:$4 sm:$0xff]   ;;  %v289_v3 = vld [vmem:[%s388_s1] ss:$16 sps:$4 sm:$0xff]   ;;  %v235_v26 = vunpack.c.l.s4 %v310_v25 }
   0x2   :  { %138 = vmatprep.subr.bf16.mxu0 %v285_v0  ;;  %v290_v4 = vld [vmem:[%s388_s1 + $0x8] ss:$16 sps:$4 sm:$0xff]   ;;  %179 = vmatprep.subr.bf16.mxu1 %v287_v2  ;;  %v291_v5 = vld [vmem:[%s388_s1 + $0x24] ss:$16 sps:$4 sm:$0xff]   ;;  %v293_v6 = vld [vmem:[%s388_s1 + $0x2c] ss:$16 sps:$4 sm:$0xff]  }
   0x3   :  { %139 = vmatpush1.bf16.msra.mxu0 %v289_v3  ;;  %180 = vmatpush1.bf16.msra.mxu1 %v290_v4  ;;  %v295_v7 = vld [vmem:[%s388_s1 + $0x20] ss:$16 sps:$4 sm:$0xff]   ;;  %v296_v8 = vld [vmem:[%s388_s1 + $0x28] ss:$16 sps:$4 sm:$0xff]   ;;  %v297_v9 = vld [vmem:[%s388_s1 + $0x44] ss:$16 sps:$4 sm:$0xff]   ;;  %v236_v33 = vunpack.c.0.s8 %v235_v26 }
   0x4   :  { %140 = vmatprep.subr.bf16.mxu0 %v291_v5  ;;  %181 = vmatprep.subr.bf16.mxu1 %v293_v6  ;;  %v299_v10 = vld [vmem:[%s388_s1 + $0x4c] ss:$16 sps:$4 sm:$0xff]   ;;  %v301_v11 = vld [vmem:[%s388_s1 + $0x40] ss:$16 sps:$4 sm:$0xff]   ;;  %v302_v12 = vld [vmem:[%s388_s1 + $0x48] ss:$16 sps:$4 sm:$0xff]  }
   0x5   :  { %v303_v13 = vld [vmem:[%s388_s1 + $0x64] ss:$16 sps:$4 sm:$0xff]   ;;  %v305_v14 = vld [vmem:[%s388_s1 + $0x6c] ss:$16 sps:$4 sm:$0xff]   ;;  %v307_v15 = vld [vmem:[%s388_s1 + $0x60] ss:$16 sps:$4 sm:$0xff]  }
   0x6   :  { %v308_v16 = vld [vmem:[%s388_s1 + $0x68] ss:$16 sps:$4 sm:$0xff]   ;;  %v15_v17 = vld [vmem:[%s389_s0] sm:$0x1]  ;;  %v35_v19 = vshrl.u32 %v34_v18, 7 }
   0x7   :  { %141 = vmatpush1.bf16.msra.mxu0 %v295_v7  ;;  %182 = vmatpush1.bf16.msra.mxu1 %v296_v8  ;;  %v32_v22 = vld [vmem:[%s390_s2] sm:$0xf] }
   0x8   :  { %142 = vmatprep.subr.bf16.mxu0 %v297_v9  ;;  %183 = vmatprep.subr.bf16.mxu1 %v299_v10  ;;  %v36_v20 = vsub.s32 0, %v35_v19  ;;  %v44_v21 = vsub.s32 2, %v35_v19  ;;  %v40_v23 = vsub.s32 1, %v35_v19  ;;  %v48_v24 = vsub.s32 3, %v35_v19 }
   0x9   :  { %v239_v47 = vsub.s32 %v236_v33, %v35_v19 }
   0xa   :  { %v37_v27 = vrot.slane %v32_v22, %v36_v20  ;;  %v45_v28 = vrot.slane %v32_v22, %v44_v21  ;;  %v41_v29 = vrot.slane %v32_v22, %v40_v23  ;;  %v49_v30 = vrot.slane %v32_v22, %v48_v24 }
   0xb   :  { %143 = vmatpush1.bf16.msra.mxu0 %v301_v11  ;;  %184 = vmatpush1.bf16.msra.mxu1 %v302_v12 }
   0xc   :  { %144 = vmatprep.subr.bf16.mxu0 %v303_v13  ;;  %185 = vmatprep.subr.bf16.mxu1 %v305_v14 }
   0xf   :  { %145 = vmatpush1.bf16.msra.mxu0 %v307_v15  ;;  %186 = vmatpush1.bf16.msra.mxu1 %v308_v16 }
  0x12   :  { %278 = vmatmul.mubr.msk.bf16.vlgmr.msra.gmra.mrb[0].mxu0 %vm134_vm0, %v15_v17  ;;  %279 = vmatmul.mubr.msk.bf16.vlgmr.msra.gmra.mrb[0].mxu1 %vm134_vm0, %v15_v17 }
  0xe5   :  { %v172_v31 = vpop.f32.mrb[0].mxu0  ;;  %v213_v32 = vpop.f32.mrb[0].mxu1 }
  0xe6   :  { %v173_v34 = vadd.f32 %v172_v31, %v37_v27  ;;  %v214_v35 = vadd.f32 %v213_v32, %v45_v28  ;;  %v174_v36 = vpop.f32.mrb[1].mxu0  ;;  %v215_v37 = vpop.f32.mrb[1].mxu1 }
  0xe7   :  { %v175_v38 = vadd.f32 %v174_v36, %v41_v29  ;;  %v216_v39 = vadd.f32 %v215_v37, %v49_v30  ;;  %v176_v40 = vpop.f32.mrb[2].mxu0  ;;  %v217_v41 = vpop.f32.mrb[2].mxu1 }
  0xe8   :  { %v220_v42 = vmax.f32 %v173_v34, 0.0  ;;  %v222_v43 = vmax.f32 %v214_v35, 0.0  ;;  %v177_v44 = vpop.f32.mrb[3].mxu0  ;;  %v218_v45 = vpop.f32.mrb[3].mxu1 }
  0xe9   :  { %v221_v46 = vmax.f32 %v175_v38, 0.0  ;;  %v223_v48 = vmax.f32 %v216_v39, 0.0 }
  0xeb   :  { %v280_v49 = vpack.c.bf16 %v221_v46, %v220_v42  ;;  %v281_v50 = vpack.c.bf16 %v223_v48, %v222_v43 }
  0xed   :  { %v240_v51 = vrot.slane %v280_v49, %v239_v47  ;;  %v247_v52 = vrot.slane %v281_v50, %v239_v47 }
  0xef   :  { %v248_v53 = vcombine.low %v240_v51, %v247_v52 }
  0xf1   :  { %282 = vst.sshfl [vmem:[%s391_s3] sm:$0x55 pattern:$0x73625140] %v248_v53 }

// kernel: c51_forward.7
= control target key start
LH: loop header
LB: loop body
LE: loop exit
PB: predicated region body
PF: predicated region fallthrough
CT: control target
= control target key end

     0   :  { %v626_v21 = vmov 1966171168   ;;  %v100_v23 = vlaneseq  ;;  %v627_v40 = vmov 0.0   ;;  %vm628_vm0 = vmmov 0   ;;  %s766_s1 = inlined_call_operand.vmem [shape: bf16[576,64], index: 1, kind: input, shape index: {}]   ;;  %s767_s0 = inlined_call_operand.vmem [shape: bf16[2,576], index: 0, kind: input, shape index: {}]   ;;  %s768_s2 = inlined_call_operand.vmem [shape: f32[1,64], index: 2, kind: input, shape index: {}]   ;;  %s769_s3 = inlined_call_operand.vmem [shape: bf16[2,64], index: 3, kind: output, shape index: {}]  }
   0x1   :  { %v589_v0 = vld [vmem:[%s766_s1 + $0x40] sm:$0xff]   ;;  %v593_v4 = vld [vmem:[%s766_s1 + $0x48] sm:$0xff]   ;;  %v597_v8 = vld [vmem:[%s766_s1 + $0x50] sm:$0xff]   ;;  %v98_v22 = vunpack.c.l.s4 %v626_v21  ;;  %vm355_vm1 = vcmask 523264   ;;  %vm481_vm2 = vcmask 516096  }
   0x2   :  { %v590_v1 = vld [vmem:[%s766_s1] sm:$0xff]   ;;  %525 = vmatprep.subr.bf16.mxu0 %v589_v0  ;;  %v594_v5 = vld [vmem:[%s766_s1 + $0x8] sm:$0xff]   ;;  %v598_v9 = vld [vmem:[%s766_s1 + $0x10] sm:$0xff]   ;;  %v101_v29 = vshrl.u32 %v100_v23, 7 }
   0x3   :  { %v591_v2 = vld [vmem:[%s766_s1 + $0xc0] sm:$0xff]   ;;  %526 = vmatpush3.bf16.msra.mxu0 %v590_v1  ;;  %v595_v6 = vld [vmem:[%s766_s1 + $0xc8] sm:$0xff]   ;;  %v599_v10 = vld [vmem:[%s766_s1 + $0xd0] sm:$0xff]   ;;  %v99_v28 = vunpack.c.0.s8 %v98_v22 }
   0x4   :  { %v592_v3 = vld [vmem:[%s766_s1 + $0x80] sm:$0xff]   ;;  %547 = vmatprep.subr.bf16.mxu1 %v591_v2  ;;  %527 = vmatprep.subr.bf16.mxu0 %v593_v4  ;;  %v596_v7 = vld [vmem:[%s766_s1 + $0x88] sm:$0xff]   ;;  %v600_v11 = vld [vmem:[%s766_s1 + $0x90] sm:$0xff]  }
   0x5   :  { %548 = vmatpush3.bf16.msra.mxu1 %v592_v3  ;;  %v601_v12 = vld [vmem:[%s766_s1 + $0x58] sm:$0xff]   ;;  %v605_v16 = vld [vmem:[%s766_s1 + $0x60] sm:$0xff]   ;;  %v609_v20 = vld [vmem:[%s766_s1 + $0x68] sm:$0xff]   ;;  %v102_v34 = vsub.s32 %v99_v28, %v101_v29 }
   0x6   :  { %549 = vmatprep.subr.bf16.mxu1 %v595_v6  ;;  %v602_v13 = vld [vmem:[%s766_s1 + $0x18] sm:$0xff]   ;;  %v606_v17 = vld [vmem:[%s766_s1 + $0x20] sm:$0xff]   ;;  %v610_v24 = vld [vmem:[%s766_s1 + $0x28] sm:$0xff]  }
   0x7   :  { %528 = vmatpush3.bf16.msra.mxu0 %v594_v5  ;;  %v603_v14 = vld [vmem:[%s766_s1 + $0xd8] sm:$0xff]   ;;  %v607_v18 = vld [vmem:[%s766_s1 + $0xe0] sm:$0xff]   ;;  %v611_v25 = vld [vmem:[%s766_s1 + $0xe8] sm:$0xff]  }
   0x8   :  { %529 = vmatprep.subr.bf16.mxu0 %v597_v8  ;;  %v604_v15 = vld [vmem:[%s766_s1 + $0x98] sm:$0xff]   ;;  %v608_v19 = vld [vmem:[%s766_s1 + $0xa0] sm:$0xff]   ;;  %v612_v26 = vld [vmem:[%s766_s1 + $0xa8] sm:$0xff]  }
   0x9   :  { %550 = vmatpush3.bf16.msra.mxu1 %v596_v7  ;;  %v613_v27 = vld [vmem:[%s766_s1 + $0x70] sm:$0xff]   ;;  %v617_v33 = vld [vmem:[%s766_s1 + $0x78] sm:$0xff]   ;;  %v15_v37 = vld [vmem:[%s767_s0] sm:$0x1f] }
   0xa   :  { %551 = vmatprep.subr.bf16.mxu1 %v599_v10  ;;  %v614_v30 = vld [vmem:[%s766_s1 + $0x30] sm:$0xff]   ;;  %v618_v35 = vld [vmem:[%s766_s1 + $0x38] sm:$0xff]   ;;  %v103_v38 = vrot.slane %v15_v37, %v102_v34  ;;  %v622_v44 = vld [vmem:[%s766_s1 + $0x100] sm:$0xff]   ;;  %v96_v48 = vcombine.high %v15_v37, %v15_v37 }
   0xb   :  { %530 = vmatpush3.bf16.msra.mxu0 %v598_v9  ;;  %v615_v31 = vld [vmem:[%s766_s1 + $0xf0] sm:$0xff]   ;;  %v619_v36 = vld [vmem:[%s766_s1 + $0xf8] sm:$0xff]   ;;  %v623_v47 = vld [vmem:[%s766_s1 + $0x108] sm:$0xff]  }
   0xc   :  { %531 = vmatprep.subr.bf16.mxu0 %v601_v12  ;;  %v616_v32 = vld [vmem:[%s766_s1 + $0xb0] sm:$0xff]   ;;  %v621_v39 = vld [vmem:[%s766_s1 + $0xb8] sm:$0xff]   ;;  %v111_v41 = vcombine.high %v103_v38, %v103_v38  ;;  %v118_v42 = vrot.slane %v103_v38, %v102_v34  ;;  %v110_v50 = vrot.slane %v96_v48, %v102_v34  ;;  %v487_v54 = vld [vmem:[%s768_s2] ss:$0 sm:$0xff] }
   0xd   :  { %552 = vmatpush3.bf16.msra.mxu1 %v600_v11  ;;  %v624_v49 = vld [vmem:[%s766_s1 + $0x110] sm:$0xff]   ;;  %v625_v51 = vld [vmem:[%s766_s1 + $0x118] sm:$0xff]  }
   0xe   :  { %553 = vmatprep.subr.bf16.mxu1 %v603_v14  ;;  %v132_v43 = vrot.slane %v111_v41, %v102_v34  ;;  %v133_v45 = vcombine.high %v118_v42, %v118_v42  ;;  %v125_v52 = vrot.slane %v110_v50, %v102_v34 }
   0xf   :  { %532 = vmatpush3.bf16.msra.mxu0 %v602_v13 }
  0x10   :  { %533 = vmatprep.subr.bf16.mxu0 %v605_v16  ;;  %391 = vmatprep.mubr.bf16.mxu0 %v132_v43  ;;  %v134_v46 = vcombine.high %v132_v43, %v132_v43 }
  0x11   :  { %554 = vmatpush3.bf16.msra.mxu1 %v604_v15 }
  0x12   :  { %555 = vmatprep.subr.bf16.mxu1 %v607_v18  ;;  %431 = vmatprep.mubr.bf16.mxu1 %v134_v46 }
  0x13   :  { %534 = vmatpush3.bf16.msra.mxu0 %v606_v17 }
  0x14   :  { %535 = vmatprep.subr.bf16.mxu0 %v609_v20 }
  0x15   :  { %556 = vmatpush3.bf16.msra.mxu1 %v608_v19 }
  0x16   :  { %557 = vmatprep.subr.bf16.mxu1 %v611_v25 }
  0x17   :  { %536 = vmatpush3.bf16.msra.mxu0 %v610_v24 }
  0x18   :  { %537 = vmatprep.subr.bf16.mxu0 %v613_v27 }
  0x19   :  { %558 = vmatpush3.bf16.msra.mxu1 %v612_v26 }
  0x1a   :  { %559 = vmatprep.subr.bf16.mxu1 %v615_v31 }
  0x1b   :  { %538 = vmatpush3.bf16.msra.mxu0 %v614_v30 }
  0x1c   :  { %539 = vmatprep.subr.bf16.mxu0 %v617_v33 }
  0x1d   :  { %560 = vmatpush3.bf16.msra.mxu1 %v616_v32 }
  0x1e   :  { %561 = vmatprep.subr.bf16.mxu1 %v619_v36 }
  0x1f   :  { %540 = vmatpush3.bf16.msra.mxu0 %v618_v35 }
  0x20   :  { %574 = vmatprep.subr.bf16.mxu0 %v627_v40 }
  0x21   :  { %562 = vmatpush3.bf16.msra.mxu1 %v621_v39 }
  0x22   :  { %392 = vmatmul.mubr.bf16.vlgmr.msra.gmra.mrb[0].mxu0 %v118_v42 }
  0x23   :  { %575 = vmatpush3.bf16.msra.mxu0 %v622_v44  ;;  %582 = vmatprep.mubr.msk.bf16.mxu0 %vm628_vm0, %v627_v40 }
  0x24   :  { %432 = vmatmul.mubr.bf16.vlgmr.msra.gmra.mrb[0].mxu1 %v133_v45  ;;  %576 = vmatprep.subr.bf16.mxu0 %v627_v40 }
  0x27   :  { %577 = vmatpush3.bf16.msra.mxu0 %v623_v47 }
  0x28   :  { %578 = vmatprep.subr.bf16.mxu0 %v627_v40 }
  0x2b   :  { %579 = vmatpush3.bf16.msra.mxu0 %v624_v49 }
  0x2c   :  { %580 = vmatprep.subr.bf16.mxu0 %v627_v40 }
  0x2f   :  { %581 = vmatpush3.bf16.msra.mxu0 %v625_v51 }
  0x32   :  { %583 = vmatmul.mubr.msk.bf16.vlgmr.msra.gmra.mrb[4].mxu0 %vm355_vm1, %v125_v52 }
  0xf5   :  { %v541_v53 = vpop.f32.mrb[0].mxu0 }
  0xf6   :  { %v542_v55 = vpop.f32.mrb[1].mxu0 }
  0xf7   :  { %v543_v56 = vadd.f32 %v542_v55, %v541_v53  ;;  %v544_v57 = vpop.f32.mrb[2].mxu0  ;;  %v563_v58 = vpop.f32.mrb[0].mxu1 }
  0xf8   :  { %v545_v59 = vpop.f32.mrb[3].mxu0  ;;  %v564_v60 = vpop.f32.mrb[1].mxu1 }
  0xf9   :  { %v394_v61 = vadd.f32 %v543_v56, %v487_v54  ;;  %v565_v62 = vadd.f32 %v564_v60, %v563_v58  ;;  %v566_v63 = vpop.f32.mrb[2].mxu1 }
  0xfa   :  { %v567_v0 = vpop.f32.mrb[3].mxu1 }
  0xfb   :  { %v434_v1 = vadd.f32 %v565_v62, %v394_v61 }
 0x105   :  { %v473_v2 = vpop.f32.mrb[4].mxu0 }
 0x106   :  { %v474_v3 = vadd.f32 %v473_v2, %v434_v1  ;;  %v584_v4 = vpop.f32.mrb[5].mxu0 }
 0x107   :  { %v476_v5 = vpop.f32.mrb[6].mxu0 }
 0x108   :  { %v479_v6 = vmax.f32 %v474_v3, 0.0  ;;  %v585_v7 = vpop.f32.mrb[7].mxu0 }
 0x10a   :  { %v480_v8 = vpack.c.bf16 %v479_v6, %v479_v6 }
 0x10c   :  { %482 = vst.msk [vmem:[%s769_s3] sm:$0x1] %vm481_vm2, %v480_v8 }

// kernel: c51_forward.9
= control target key start
LH: loop header
LB: loop body
LE: loop exit
PB: predicated region body
PF: predicated region fallthrough
CT: control target
= control target key end

     0   :  { %v146_v20 = vlaneseq  ;;  %v1330_v22 = vmov 1966171168   ;;  %vm876_vm0 = vcmask 828824   ;;  %vm920_vm1 = vcmask 615624   ;;  %s1333_s14 = smov 103   ;;  %s1334_s15 = smov 26   ;;  %s1706_s1 = inlined_call_operand.vmem [shape: bf16[512,306], index: 1, kind: input, shape index: {}]   ;;  %s1707_s0 = inlined_call_operand.vmem [shape: bf16[2,512], index: 0, kind: input, shape index: {}]   ;;  %s1708_s2 = inlined_call_operand.vmem [shape: f32[1,306], index: 2, kind: input, shape index: {}]   ;;  %s1709_s3 = inlined_call_operand.vmem [shape: f32[2,306], index: 3, kind: output, shape index: {}]  }
   0x1   :  { %v1174_v0 = vld [vmem:[%s1706_s1 + $0x4] ss:$12 sps:$4 sm:$0xff]   ;;  %v1176_v1 = vld [vmem:[%s1706_s1] ss:$12 sps:$4 sm:$0xff]   ;;  %v1177_v2 = vld [vmem:[%s1706_s1 + $0x1c] ss:$12 sps:$4 sm:$0xff]   ;;  %v171_v23 = vunpack.c.l.s4 %v1330_v22 }
   0x2   :  { %702 = vmatprep.subr.bf16.mxu0 %v1174_v0  ;;  %v1179_v3 = vld [vmem:[%s1706_s1 + $0x18] ss:$12 sps:$4 sm:$0xff]   ;;  %v1180_v4 = vld [vmem:[%s1706_s1 + $0x34] ss:$12 sps:$4 sm:$0xff]   ;;  %v1182_v5 = vld [vmem:[%s1706_s1 + $0x30] ss:$12 sps:$4 sm:$0xff]  }
   0x3   :  { %703 = vmatpush1.bf16.msra.mxu0 %v1176_v1  ;;  %v1183_v6 = vld [vmem:[%s1706_s1 + $0x4c] ss:$12 sps:$4 sm:$0xff]   ;;  %v1185_v7 = vld [vmem:[%s1706_s1 + $0x48] ss:$12 sps:$4 sm:$0xff]   ;;  %v1186_v8 = vld [vmem:[%s1706_s1 + $0x64] ss:$12 sps:$4 sm:$0xff]   ;;  %v172_v30 = vunpack.c.0.s8 %v171_v23 }
   0x4   :  { %704 = vmatprep.subr.bf16.mxu0 %v1177_v2  ;;  %v1188_v9 = vld [vmem:[%s1706_s1 + $0x60] ss:$12 sps:$4 sm:$0xff]   ;;  %v1189_v10 = vld [vmem:[%s1706_s1 + $0x7c] ss:$12 sps:$4 sm:$0xff]   ;;  %v1191_v13 = vld [vmem:[%s1706_s1 + $0x78] ss:$12 sps:$4 sm:$0xff]  }
   0x5   :  { %v1207_v11 = vld [vmem:[%s1706_s1 + $0xc8] ss:$12 sps:$4 sm:$0xff]   ;;  %v1212_v14 = vld [vmem:[%s1706_s1 + $0xe0] ss:$12 sps:$4 sm:$0xff]   ;;  %v1194_v17 = vld [vmem:[%s1706_s1 + $0x90] ss:$12 sps:$4 sm:$0xff]  }
   0x6   :  { %v1208_v12 = vld [vmem:[%s1706_s1 + $0x8] ss:$12 sps:$4 sm:$0xff]   ;;  %1117 = vmatprep.subr.bf16.mxu1 %v1207_v11  ;;  %v1213_v15 = vld [vmem:[%s1706_s1 + $0x20] ss:$12 sps:$4 sm:$0xff]   ;;  %v1217_v18 = vld [vmem:[%s1706_s1 + $0xf8] ss:$12 sps:$4 sm:$0xff]  }
   0x7   :  { %705 = vmatpush1.bf16.msra.mxu0 %v1179_v3  ;;  %1118 = vmatpush3.bf16.msra.mxu1 %v1208_v12  ;;  %v1192_v16 = vld [vmem:[%s1706_s1 + $0x94] ss:$12 sps:$4 sm:$0xff]   ;;  %v1218_v19 = vld [vmem:[%s1706_s1 + $0x38] ss:$12 sps:$4 sm:$0xff]   ;;  %v1222_v24 = vld [vmem:[%s1706_s1 + $0x110] ss:$12 sps:$4 sm:$0xff]  }
   0x8   :  { %706 = vmatprep.subr.bf16.mxu0 %v1180_v4  ;;  %1119 = vmatprep.subr.bf16.mxu1 %v1212_v14  ;;  %v1195_v21 = vld [vmem:[%s1706_s1 + $0xac] ss:$12 sps:$4 sm:$0xff]   ;;  %v1223_v25 = vld [vmem:[%s1706_s1 + $0x50] ss:$12 sps:$4 sm:$0xff]   ;;  %v1197_v26 = vld [vmem:[%s1706_s1 + $0xa8] ss:$12 sps:$4 sm:$0xff]  }
   0x9   :  { %v1198_v27 = vld [vmem:[%s1706_s1 + $0xc4] ss:$12 sps:$4 sm:$0xff]   ;;  %v1432_v28 = vshrl.u32 %v146_v20, 7  ;;  %v1227_v29 = vld [vmem:[%s1706_s1 + $0x128] ss:$12 sps:$4 sm:$0xff]   ;;  %vm892_vm2 = vcmask 1042224  }
   0xa   :  { %v1200_v31 = vld [vmem:[%s1706_s1 + $0xc0] ss:$12 sps:$4 sm:$0xff]   ;;  %v1228_v32 = vld [vmem:[%s1706_s1 + $0x68] ss:$12 sps:$4 sm:$0xff]   ;;  %v1203_v36 = vld [vmem:[%s1706_s1 + $0xd8] ss:$12 sps:$4 sm:$0xff]  }
   0xb   :  { %707 = vmatpush1.bf16.msra.mxu0 %v1182_v5  ;;  %1120 = vmatpush3.bf16.msra.mxu1 %v1213_v15  ;;  %v1201_v33 = vld [vmem:[%s1706_s1 + $0xdc] ss:$12 sps:$4 sm:$0xff]   ;;  %v1232_v34 = vld [vmem:[%s1706_s1 + $0x140] ss:$12 sps:$4 sm:$0xff]   ;;  %v175_v35 = vsub.s32 %v172_v30, %v1432_v28  ;;  %v1237_v42 = vld [vmem:[%s1706_s1 + $0x158] ss:$12 sps:$4 sm:$0xff]  }
   0xc   :  { %708 = vmatprep.subr.bf16.mxu0 %v1183_v6  ;;  %1121 = vmatprep.subr.bf16.mxu1 %v1217_v18  ;;  %v1020_v37 = vld.sshfl [vmem:[%s1707_s0] sm:$0x33 pattern:$0x75316420]  ;;  %v1206_v43 = vld [vmem:[%s1706_s1 + $0xf0] ss:$12 sps:$4 sm:$0xff]  }
   0xd   :  { %v1233_v38 = vld [vmem:[%s1706_s1 + $0x80] ss:$12 sps:$4 sm:$0xff]   ;;  %v169_v39 = vcombine.high %v1020_v37, %v1020_v37  ;;  %v1238_v44 = vld [vmem:[%s1706_s1 + $0x98] ss:$12 sps:$4 sm:$0xff]   ;;  %v1242_v45 = vld [vmem:[%s1706_s1 + $0x170] ss:$12 sps:$4 sm:$0xff]   ;;  %v1495_v54 = vrot.slane %v1020_v37, %v175_v35 }
   0xe   :  { %v1204_v40 = vld [vmem:[%s1706_s1 + $0xf4] ss:$12 sps:$4 sm:$0xff]   ;;  %v1209_v46 = vld [vmem:[%s1706_s1 + $0x10c] ss:$12 sps:$4 sm:$0xff]   ;;  %v1243_v48 = vld [vmem:[%s1706_s1 + $0xb0] ss:$12 sps:$4 sm:$0xff]  }
   0xf   :  { %709 = vmatpush1.bf16.msra.mxu0 %v1185_v7  ;;  %1122 = vmatpush3.bf16.msra.mxu1 %v1218_v19  ;;  %v183_v41 = vrot.slane %v169_v39, %v175_v35  ;;  %v1211_v47 = vld [vmem:[%s1706_s1 + $0x108] ss:$12 sps:$4 sm:$0xff]   ;;  %v1214_v50 = vld [vmem:[%s1706_s1 + $0x124] ss:$12 sps:$4 sm:$0xff]   ;;  %v1216_v51 = vld [vmem:[%s1706_s1 + $0x120] ss:$12 sps:$4 sm:$0xff]   ;;  %v184_v20 = vcombine.high %v1495_v54, %v1495_v54 }
  0x10   :  { %710 = vmatprep.subr.bf16.mxu0 %v1186_v8  ;;  %1123 = vmatprep.subr.bf16.mxu1 %v1222_v24  ;;  %v1247_v49 = vld [vmem:[%s1706_s1 + $0x248] ss:$12 sps:$4 sm:$0xff]   ;;  %v1252_v55 = vld [vmem:[%s1706_s1 + $0x260] ss:$12 sps:$4 sm:$0xff]   ;;  %v1221_v58 = vld [vmem:[%s1706_s1 + $0x138] ss:$12 sps:$4 sm:$0xff]  }
  0x11   :  { %734 = vmatprep.mubr.bf16.mxu0 %v183_v41  ;;  %816 = vmatprep.mubr.bf16.mxu1 %v183_v41  ;;  %v1248_v52 = vld [vmem:[%s1706_s1 + $0x188] ss:$12 sps:$4 sm:$0xff]   ;;  %v185_v53 = vcombine.high %v183_v41, %v183_v41  ;;  %v1253_v57 = vld [vmem:[%s1706_s1 + $0x1a0] ss:$12 sps:$4 sm:$0xff]   ;;  %v1257_v59 = vld [vmem:[%s1706_s1 + $0x278] ss:$12 sps:$4 sm:$0xff]  }
  0x12   :  { %v1219_v56 = vld [vmem:[%s1706_s1 + $0x13c] ss:$12 sps:$4 sm:$0xff]   ;;  %v1224_v60 = vld [vmem:[%s1706_s1 + $0x154] ss:$12 sps:$4 sm:$0xff]   ;;  %v1258_v62 = vld [vmem:[%s1706_s1 + $0x1b8] ss:$12 sps:$4 sm:$0xff]  }
  0x13   :  { %711 = vmatpush1.bf16.msra.mxu0 %v1188_v9  ;;  %1124 = vmatpush3.bf16.msra.mxu1 %v1223_v25  ;;  %v1226_v61 = vld [vmem:[%s1706_s1 + $0x150] ss:$12 sps:$4 sm:$0xff]   ;;  %v1229_v0 = vld [vmem:[%s1706_s1 + $0x16c] ss:$12 sps:$4 sm:$0xff]   ;;  %v1231_v1 = vld [vmem:[%s1706_s1 + $0x168] ss:$12 sps:$4 sm:$0xff]  }
  0x14   :  { %712 = vmatprep.subr.bf16.mxu0 %v1189_v10  ;;  %1125 = vmatprep.subr.bf16.mxu1 %v1227_v29  ;;  %v1262_v63 = vld [vmem:[%s1706_s1 + $0x290] ss:$12 sps:$4 sm:$0xff]   ;;  %v1267_v3 = vld [vmem:[%s1706_s1 + $0x2a8] ss:$12 sps:$4 sm:$0xff]   ;;  %v1234_v5 = vld [vmem:[%s1706_s1 + $0x180] ss:$12 sps:$4 sm:$0xff]  }
  0x15   :  { %v1263_v2 = vld [vmem:[%s1706_s1 + $0x1d0] ss:$12 sps:$4 sm:$0xff]   ;;  %v1268_v6 = vld [vmem:[%s1706_s1 + $0x1e8] ss:$12 sps:$4 sm:$0xff]   ;;  %v1272_v7 = vld [vmem:[%s1706_s1 + $0x2c0] ss:$12 sps:$4 sm:$0xff]  }
  0x16   :  { %v1236_v4 = vld [vmem:[%s1706_s1 + $0x184] ss:$12 sps:$4 sm:$0xff]   ;;  %v1241_v8 = vld [vmem:[%s1706_s1 + $0x19c] ss:$12 sps:$4 sm:$0xff]   ;;  %v1273_v10 = vld [vmem:[%s1706_s1 + $0x200] ss:$12 sps:$4 sm:$0xff]  }
  0x17   :  { %713 = vmatpush1.bf16.msra.mxu0 %v1191_v13  ;;  %1126 = vmatpush3.bf16.msra.mxu1 %v1228_v32  ;;  %v1239_v9 = vld [vmem:[%s1706_s1 + $0x198] ss:$12 sps:$4 sm:$0xff]   ;;  %v1246_v12 = vld [vmem:[%s1706_s1 + $0x1b4] ss:$12 sps:$4 sm:$0xff]   ;;  %v1244_v13 = vld [vmem:[%s1706_s1 + $0x1b0] ss:$12 sps:$4 sm:$0xff]  }
  0x18   :  { %714 = vmatprep.subr.bf16.mxu0 %v1192_v16  ;;  %1127 = vmatprep.subr.bf16.mxu1 %v1232_v34  ;;  %v1277_v11 = vld [vmem:[%s1706_s1 + $0x2d8] ss:$12 sps:$4 sm:$0xff]   ;;  %v1282_v15 = vld [vmem:[%s1706_s1 + $0x2f0] ss:$12 sps:$4 sm:$0xff]   ;;  %v1249_v18 = vld [vmem:[%s1706_s1 + $0x1c8] ss:$12 sps:$4 sm:$0xff]  }
  0x19   :  { %v1278_v14 = vld [vmem:[%s1706_s1 + $0x218] ss:$12 sps:$4 sm:$0xff]   ;;  %v1261_v22 = vld [vmem:[%s1706_s1 + $0x1fc] ss:$12 sps:$4 sm:$0xff]   ;;  %v1266_v24 = vld [vmem:[%s1706_s1 + $0x214] ss:$12 sps:$4 sm:$0xff]  }
  0x1a   :  { %v1251_v16 = vld [vmem:[%s1706_s1 + $0x1cc] ss:$12 sps:$4 sm:$0xff]   ;;  %v1256_v19 = vld [vmem:[%s1706_s1 + $0x1e4] ss:$12 sps:$4 sm:$0xff]   ;;  %v1295_v39 = vld [vmem:[%s1706_s1 + $0x2bc] ss:$12 sps:$4 sm:$0xff]  }
  0x1b   :  { %715 = vmatpush1.bf16.msra.mxu0 %v1194_v17  ;;  %1128 = vmatpush3.bf16.msra.mxu1 %v1233_v38  ;;  %v1283_v17 = vld [vmem:[%s1706_s1 + $0x230] ss:$12 sps:$4 sm:$0xff]   ;;  %v1259_v23 = vld [vmem:[%s1706_s1 + $0x1f8] ss:$12 sps:$4 sm:$0xff]   ;;  %v1274_v30 = vld [vmem:[%s1706_s1 + $0x240] ss:$12 sps:$4 sm:$0xff]  }
  0x1c   :  { %716 = vmatprep.subr.bf16.mxu0 %v1195_v21  ;;  %1129 = vmatprep.subr.bf16.mxu1 %v1237_v42  ;;  %v1254_v21 = vld [vmem:[%s1706_s1 + $0x1e0] ss:$12 sps:$4 sm:$0xff]   ;;  %v1264_v25 = vld [vmem:[%s1706_s1 + $0x210] ss:$12 sps:$4 sm:$0xff]   ;;  %v1279_v32 = vld [vmem:[%s1706_s1 + $0x258] ss:$12 sps:$4 sm:$0xff]  }
  0x1d   :  { %v1276_v29 = vld [vmem:[%s1706_s1 + $0x244] ss:$12 sps:$4 sm:$0xff]   ;;  %v1289_v35 = vld [vmem:[%s1706_s1 + $0x28c] ss:$12 sps:$4 sm:$0xff]   ;;  %v1298_v41 = vld [vmem:[%s1706_s1 + $0x2d4] ss:$12 sps:$4 sm:$0xff]  }
  0x1e   :  { %v1284_v34 = vld [vmem:[%s1706_s1 + $0x270] ss:$12 sps:$4 sm:$0xff]   ;;  %v1290_v38 = vld [vmem:[%s1706_s1 + $0x2a0] ss:$12 sps:$4 sm:$0xff]   ;;  %vm894_vm3 = vcmask 197632   ;;  %vm936_vm4 = vcmask 1033824  }
  0x1f   :  { %717 = vmatpush1.bf16.msra.mxu0 %v1197_v26  ;;  %1130 = vmatpush3.bf16.msra.mxu1 %v1238_v44  ;;  %v1271_v26 = vld [vmem:[%s1706_s1 + $0x22c] ss:$12 sps:$4 sm:$0xff]   ;;  %v1292_v37 = vld [vmem:[%s1706_s1 + $0x2a4] ss:$12 sps:$4 sm:$0xff]   ;;  %v1299_v44 = vld [vmem:[%s1706_s1 + $0x2e8] ss:$12 sps:$4 sm:$0xff]  }
  0x20   :  { %718 = vmatprep.subr.bf16.mxu0 %v1198_v27  ;;  %1131 = vmatprep.subr.bf16.mxu1 %v1242_v45  ;;  %v1269_v27 = vld [vmem:[%s1706_s1 + $0x228] ss:$12 sps:$4 sm:$0xff]   ;;  %v1296_v42 = vld [vmem:[%s1706_s1 + $0x2d0] ss:$12 sps:$4 sm:$0xff]   ;;  %vm952_vm5 = vcmask 1042424   ;;  %vm954_vm6 = vcmask 402432  }
  0x21   :  { %vm864_vm7 = vcmask 410624   ;;  %s1335_s16 = smov 1   ;;  %vm911_vm8 = vcmask 211968   ;;  %vm971_vm9 = vcmask 7168   ;;  %vm984_vm10 = vcmask 203776  }
  0x22   :  { %vm980_vm11 = vcmask 416768   ;;  %vm986_vm12 = vcmask 621568   ;;  %vm982_vm13 = vcmask 834560   ;;  %vm988_vm14 = vcmask 1039360  }
  0x23   :  { %719 = vmatpush1.bf16.msra.mxu0 %v1200_v31  ;;  %1132 = vmatpush3.bf16.msra.mxu1 %v1243_v48  ;;  %v1281_v31 = vld [vmem:[%s1706_s1 + $0x25c] ss:$12 sps:$4 sm:$0xff]   ;;  %vm1010_vm15 = vcmask 1041408  }
  0x24   :  { %720 = vmatprep.subr.bf16.mxu0 %v1201_v33  ;;  %1139 = vmatprep.subr.bf16.mxu1 %v1247_v49  ;;  %v1286_v33 = vld [vmem:[%s1706_s1 + $0x274] ss:$12 sps:$4 sm:$0xff]  }
  0x26   :  { %817 = vmatmul.mubr.bf16.vlgmr.msra.gmra.mrb[0].mxu1 %v1495_v54 }
  0x27   :  { %721 = vmatpush1.bf16.msra.mxu0 %v1203_v36  ;;  %1140 = vmatpush3.bf16.msra.mxu1 %v1248_v52  ;;  %v1287_v36 = vld [vmem:[%s1706_s1 + $0x288] ss:$12 sps:$4 sm:$0xff]  }
  0x28   :  { %722 = vmatprep.subr.bf16.mxu0 %v1204_v40  ;;  %856 = vmatprep.mubr.bf16.mxu1 %v185_v53  ;;  %v1293_v40 = vld [vmem:[%s1706_s1 + $0x2b8] ss:$12 sps:$4 sm:$0xff]  }
  0x29   :  { %1141 = vmatprep.subr.bf16.mxu1 %v1252_v55 }
  0x2b   :  { %723 = vmatpush1.bf16.msra.mxu0 %v1206_v43  ;;  %1142 = vmatpush3.bf16.msra.mxu1 %v1253_v57  ;;  %v1301_v43 = vld [vmem:[%s1706_s1 + $0x2ec] ss:$12 sps:$4 sm:$0xff]   ;;  %s1331_s1 = smov 77  }
  0x2c   :  { %724 = vmatprep.subr.bf16.mxu0 %v1209_v46  ;;  %1143 = vmatprep.subr.bf16.mxu1 %v1257_v59 }
  0x2f   :  { %725 = vmatpush1.bf16.msra.mxu0 %v1211_v47  ;;  %1144 = vmatpush3.bf16.msra.mxu1 %v1258_v62 }
  0x30   :  { %726 = vmatprep.subr.bf16.mxu0 %v1214_v50  ;;  %1145 = vmatprep.subr.bf16.mxu1 %v1262_v63  ;;  %v156_v50 = vsub.s32 2, %v1432_v28 }
  0x33   :  { %727 = vmatpush1.bf16.msra.mxu0 %v1216_v51  ;;  %1146 = vmatpush3.bf16.msra.mxu1 %v1263_v2  ;;  %v144_v51 = vld [vmem:[%s1708_s2] sm:$0x7]  ;;  %s1332_s2 = smov 52  }
  0x34   :  { %728 = vmatprep.subr.bf16.mxu0 %v1219_v56  ;;  %1147 = vmatprep.subr.bf16.mxu1 %v1267_v3  ;;  %v157_v52 = vrot.slane %v144_v51, %v156_v50 }
  0x37   :  { %729 = vmatpush1.bf16.msra.mxu0 %v1221_v58  ;;  %1148 = vmatpush3.bf16.msra.mxu1 %v1268_v6 }
  0x38   :  { %730 = vmatprep.subr.bf16.mxu0 %v1224_v60  ;;  %1149 = vmatprep.subr.bf16.mxu1 %v1272_v7  ;;  %v148_v60 = vsub.s32 0, %v1432_v28 }
  0x3a   :  { %v149_v62 = vrot.slane %v144_v51, %v148_v60 }
  0x3b   :  { %731 = vmatpush1.bf16.msra.mxu0 %v1226_v61  ;;  %1150 = vmatpush3.bf16.msra.mxu1 %v1273_v10  ;;  %v152_v61 = vsub.s32 1, %v1432_v28 }
  0x3c   :  { %732 = vmatprep.subr.bf16.mxu0 %v1229_v0  ;;  %1151 = vmatprep.subr.bf16.mxu1 %v1277_v11 }
  0x3d   :  { %v153_v63 = vrot.slane %v144_v51, %v152_v61 }
  0x3f   :  { %733 = vmatpush1.bf16.msra.mxu0 %v1231_v1  ;;  %1152 = vmatpush3.bf16.msra.mxu1 %v1278_v14 }
  0x40   :  { %743 = vmatprep.subr.bf16.mxu0 %v1236_v4  ;;  %1153 = vmatprep.subr.bf16.mxu1 %v1282_v15 }
  0x42   :  { %735 = vmatmul.mubr.bf16.vlgmr.msra.gmra.mrb[0].mxu0 %v1495_v54 }
  0x43   :  { %744 = vmatpush1.bf16.msra.mxu0 %v1234_v5  ;;  %775 = vmatprep.mubr.bf16.mxu0 %v185_v53 }
  0x44   :  { %745 = vmatprep.subr.bf16.mxu0 %v1241_v8  ;;  %1154 = vmatpush3.bf16.msra.mxu1 %v1283_v17 }
  0x47   :  { %746 = vmatpush1.bf16.msra.mxu0 %v1239_v9  ;;  %857 = vmatmul.mubr.bf16.vlgmr.msra.gmra.mrb[4].mxu1 %v184_v20 }
  0x48   :  { %747 = vmatprep.subr.bf16.mxu0 %v1246_v12 }
  0x4b   :  { %748 = vmatpush1.bf16.msra.mxu0 %v1244_v13 }
  0x4c   :  { %749 = vmatprep.subr.bf16.mxu0 %v1251_v16 }
  0x4f   :  { %750 = vmatpush1.bf16.msra.mxu0 %v1249_v18 }
  0x50   :  { %751 = vmatprep.subr.bf16.mxu0 %v1256_v19 }
  0x53   :  { %752 = vmatpush1.bf16.msra.mxu0 %v1254_v21 }
  0x54   :  { %753 = vmatprep.subr.bf16.mxu0 %v1261_v22 }
  0x57   :  { %754 = vmatpush1.bf16.msra.mxu0 %v1259_v23 }
  0x58   :  { %755 = vmatprep.subr.bf16.mxu0 %v1266_v24 }
  0x5b   :  { %756 = vmatpush1.bf16.msra.mxu0 %v1264_v25 }
  0x5c   :  { %757 = vmatprep.subr.bf16.mxu0 %v1271_v26 }
  0x5f   :  { %758 = vmatpush1.bf16.msra.mxu0 %v1269_v27 }
  0x60   :  { %759 = vmatprep.subr.bf16.mxu0 %v1276_v29 }
  0x63   :  { %760 = vmatpush1.bf16.msra.mxu0 %v1274_v30 }
  0x64   :  { %761 = vmatprep.subr.bf16.mxu0 %v1281_v31 }
  0x67   :  { %762 = vmatpush1.bf16.msra.mxu0 %v1279_v32 }
  0x68   :  { %763 = vmatprep.subr.bf16.mxu0 %v1286_v33 }
  0x6b   :  { %764 = vmatpush1.bf16.msra.mxu0 %v1284_v34 }
  0x6c   :  { %765 = vmatprep.subr.bf16.mxu0 %v1289_v35 }
  0x6f   :  { %766 = vmatpush1.bf16.msra.mxu0 %v1287_v36 }
  0x70   :  { %767 = vmatprep.subr.bf16.mxu0 %v1292_v37 }
  0x73   :  { %768 = vmatpush1.bf16.msra.mxu0 %v1290_v38 }
  0x74   :  { %769 = vmatprep.subr.bf16.mxu0 %v1295_v39 }
  0x77   :  { %770 = vmatpush1.bf16.msra.mxu0 %v1293_v40 }
  0x78   :  { %771 = vmatprep.subr.bf16.mxu0 %v1298_v41 }
  0x7b   :  { %772 = vmatpush1.bf16.msra.mxu0 %v1296_v42 }
  0x7c   :  { %773 = vmatprep.subr.bf16.mxu0 %v1301_v43 }
  0x7f   :  { %774 = vmatpush1.bf16.msra.mxu0 %v1299_v44 }
  0x82   :  { %776 = vmatmul.mubr.bf16.vlgmr.msra.gmra.mrb[0].mxu0 %v184_v20 }
  0xf9   :  { %v1133_v45 = vpop.f32.mrb[0].mxu1 }
  0xfa   :  { %v1134_v46 = vpop.f32.mrb[1].mxu1 }
  0xfb   :  { %v1135_v47 = vadd.f32 %v1134_v46, %v1133_v45  ;;  %v1136_v48 = vpop.f32.mrb[2].mxu1 }
  0xfc   :  { %v1137_v49 = vpop.f32.mrb[3].mxu1 }
  0xfd   :  { %v819_v53 = vadd.f32 %v1135_v47, %v157_v52 }
 0x11a   :  { %v1155_v54 = vpop.f32.mrb[4].mxu1 }
 0x11b   :  { %v1156_v55 = vpop.f32.mrb[5].mxu1 }
 0x11c   :  { %v1157_v56 = vadd.f32 %v1156_v55, %v1155_v54  ;;  %v1158_v57 = vpop.f32.mrb[6].mxu1 }
 0x11d   :  { %v1159_v58 = vpop.f32.mrb[7].mxu1 }
 0x11e   :  { %v859_v59 = vadd.f32 %v1157_v56, %v819_v53 }
 0x120   :  { %v955_v13 = vsel %vm954_vm6, %v859_v59, -inf }
 0x155   :  { %v777_v0 = vpop.f32.mrb[0].mxu0 }
 0x156   :  { %v1663_v1 = vadd.f32 %v777_v0, %v149_v62  ;;  %v779_v2 = vpop.f32.mrb[1].mxu0 }
 0x157   :  { %v1162_v3 = vadd.f32 %v779_v2, %v153_v63  ;;  %v781_v4 = vpop.f32.mrb[2].mxu0 }
 0x158   :  { %v782_v5 = vpop.f32.mrb[3].mxu0  ;;  %v877_v6 = vsel %vm876_vm0, %v1663_v1, -inf  ;;  %v893_v8 = vsel %vm892_vm2, %v1663_v1, -inf  ;;  %v865_v14 = vsel %vm864_vm7, %v1663_v1, -inf  ;;  %vm1011_vm0 = vcmask 1043458  }
 0x159   :  { %878 = vmax.xlane.f32.xlu1 %v877_v6  ;;  %v921_v7 = vsel %vm920_vm1, %v1162_v3, -inf  ;;  %v895_v9 = vsel %vm894_vm3, %v1162_v3, -inf  ;;  %v937_v10 = vsel %vm936_vm4, %v1162_v3, -inf  ;;  %v953_v12 = vsel %vm952_vm5, %v1162_v3, -inf  ;;  %vm1012_vm1 = vmor %vm1011_vm0, %vm1010_vm15 }
 0x15a   :  { %922 = vmax.xlane.f32.xlu0 %v921_v7  ;;  %v896_v11 = vmax.f32 %v893_v8, %v895_v9  ;;  %v956_v15 = vmax.f32 %v953_v12, %v955_v13  ;;  %v1336_v6 = vmov 1983009808   ;;  %vm1013_vm2 = vcmask 406532  }
 0x15b   :  { %v995_v7 = vunpack.c.l.s4 %v1336_v6  ;;  %vm1014_vm3 = vmor %vm1013_vm2, %vm1012_vm1 }
 0x15d   :  { %938 = vmax.xlane.f32.xlu1 %v937_v10 }
 0x15e   :  { %897 = vmax.xlane.f32.xlu0 %v896_v11 }
 0x161   :  { %866 = vmax.xlane.f32.xlu1 %v865_v14  ;;  %v996_v14 = vunpack.c.0.s8 %v995_v7 }
 0x162   :  { %957 = vmax.xlane.f32.xlu0 %v956_v15 }
 0x1e6   :  { %v879_v16 = vpop.xlane.xlu1 %878 }
 0x1e7   :  { %v880_v17 = vsub.f32 %v1663_v1, %v879_v16  ;;  %v923_v18 = vpop.xlane.xlu0 %922 }
 0x1e8   :  { %v924_v19 = vsub.f32 %v1162_v3, %v923_v18 }
 0x1e9   :  { %v881_v20 = vmul.f32 1.442695, %v880_v17 }
 0x1ea   :  { %v925_v21 = vmul.f32 1.442695, %v924_v19  ;;  %v939_v22 = vpop.xlane.xlu1 %938 }
 0x1eb   :  { %1302 = vpow2.f32 %v881_v20  ;;  %v940_v23 = vsub.f32 %v1162_v3, %v939_v22  ;;  %v898_v24 = vpop.xlane.xlu0 %897  ;;  %v999_v22 = vsub.s32 %v996_v14, %v1432_v28 }
 0x1ec   :  { %v899_v25 = vsub.f32 %v1663_v1, %v898_v24  ;;  %v900_v26 = vsub.f32 %v1162_v3, %v898_v24  ;;  %1304 = vpow2.f32 %v925_v21 }
 0x1ed   :  { %v941_v27 = vmul.f32 1.442695, %v940_v23 }
 0x1ee   :  { %v901_v29 = vmul.f32 1.442695, %v899_v25  ;;  %v903_v30 = vmul.f32 1.442695, %v900_v26  ;;  %v867_v43 = vpop.xlane.xlu1 %866 }
 0x1ef   :  { %1306 = vpow2.f32 %v941_v27  ;;  %v958_v31 = vpop.xlane.xlu0 %957  ;;  %v868_v44 = vsub.f32 %v1663_v1, %v867_v43 }
 0x1f0   :  { %v959_v32 = vsub.f32 %v1162_v3, %v958_v31  ;;  %v960_v33 = vsub.f32 %v859_v59, %v958_v31  ;;  %1308 = vpow2.f32 %v901_v29 }
 0x1f1   :  { %1310 = vpow2.f32 %v903_v30  ;;  %v869_v45 = vmul.f32 1.442695, %v868_v44 }
 0x1f2   :  { %v961_v34 = vmul.f32 1.442695, %v959_v32  ;;  %v963_v35 = vmul.f32 1.442695, %v960_v33 }
 0x1f4   :  { %1312 = vpow2.f32 %v961_v34 }
 0x1f5   :  { %v1671_v36 = vpop.eup %1302  ;;  %1314 = vpow2.f32 %v963_v35 }
 0x1f6   :  { %884 = vrot.lane.b32.xlu1 %v1671_v36, %s1331_s1  ;;  %v1674_v37 = vpop.eup %1304  ;;  %1316 = vpow2.f32 %v869_v45 }
 0x1f9   :  { %v1676_v38 = vpop.eup %1306 }
 0x1fa   :  { %944 = vrot.lane.b32.xlu0 %v1676_v38, %s1332_s2  ;;  %928 = vrot.lane.b32.xlu1 %v1674_v37, %s1333_s14  ;;  %v1680_v39 = vpop.eup %1308 }
 0x1fb   :  { %v1311_v40 = vpop.eup %1310 }
 0x1fe   :  { %907 = vrot.lane.b32.xlu0 %v1680_v39, %s1334_s15  ;;  %909 = vrot.lane.b32.xlu1 %v1311_v40, %s1334_s15  ;;  %v1683_v41 = vpop.eup %1312 }
 0x1ff   :  { %v1685_v42 = vpop.eup %1314 }
 0x200   :  { %v1317_v46 = vpop.eup %1316 }
 0x201   :  { %v871_v47 = vsel %vm864_vm7, %v1317_v46, 0.0 }
 0x202   :  { %969 = vrot.lane.b32.xlu0 %v1685_v42, %s1335_s16  ;;  %967 = vrot.lane.b32.xlu1 %v1683_v41, %s1335_s16 }
 0x226   :  { %872 = vadd.xlane.f32.xlu1 %v871_v47 }
 0x268   :  { %v885_v48 = vpop.permute.xlu1 %884 }
 0x269   :  { %v887_v49 = vsel %vm864_vm7, %v885_v48, 0.0 }
 0x26a   :  { %888 = vadd.xlane.f32.xlu0 %v887_v49 }
 0x26c   :  { %v945_v50 = vpop.permute.xlu0 %944  ;;  %v929_v51 = vpop.permute.xlu1 %928 }
 0x26d   :  { %v947_v52 = vsel %vm864_vm7, %v945_v50, 0.0  ;;  %v931_v53 = vsel %vm864_vm7, %v929_v51, 0.0 }
 0x26e   :  { %948 = vadd.xlane.f32.xlu1 %v947_v52  ;;  %932 = vadd.xlane.f32.xlu0 %v931_v53 }
 0x270   :  { %v908_v54 = vpop.permute.xlu0 %907  ;;  %v910_v55 = vpop.permute.xlu1 %909 }
 0x271   :  { %v912_v56 = vsel %vm911_vm8, %v908_v54, %v910_v55 }
 0x272   :  { %v914_v57 = vsel %vm864_vm7, %v912_v56, 0.0 }
 0x273   :  { %915 = vadd.xlane.f32.xlu0 %v914_v57 }
 0x274   :  { %v970_v58 = vpop.permute.xlu0 %969  ;;  %v968_v59 = vpop.permute.xlu1 %967 }
 0x275   :  { %v972_v60 = vsel %vm971_vm9, %v968_v59, %v970_v58 }
 0x276   :  { %v974_v61 = vsel %vm864_vm7, %v972_v60, 0.0 }
 0x277   :  { %975 = vadd.xlane.f32.xlu0 %v974_v61 }
 0x2b3   :  { %v873_v63 = vpop.xlane.xlu1 %872 }
 0x2b4   :  { %1318 = vrcp.f32 %v873_v63 }
 0x2be   :  { %v1319_v4 = vpop.eup %1318 }
 0x2bf   :  { %v875_v18 = vmul.f32 %v1319_v4, %v1317_v46 }
 0x2f7   :  { %v889_v62 = vpop.xlane.xlu0 %888 }
 0x2fb   :  { %v933_v0 = vpop.xlane.xlu0 %932  ;;  %v949_v1 = vpop.xlane.xlu1 %948 }
 0x2fc   :  { %1320 = vrcp.f32 %v933_v0 }
 0x2fd   :  { %1322 = vrcp.f32 %v889_v62 }
 0x300   :  { %v916_v2 = vpop.xlane.xlu0 %915 }
 0x301   :  { %1324 = vrcp.f32 %v916_v2 }
 0x302   :  { %1326 = vrcp.f32 %v949_v1 }
 0x304   :  { %v976_v3 = vpop.xlane.xlu0 %975 }
 0x305   :  { %1328 = vrcp.f32 %v976_v3 }
 0x306   :  { %v1321_v5 = vpop.eup %1320 }
 0x307   :  { %v1323_v8 = vpop.eup %1322  ;;  %v935_v11 = vmul.f32 %v1321_v5, %v1674_v37 }
 0x308   :  { %v891_v13 = vmul.f32 %v1323_v8, %v1671_v36 }
 0x30a   :  { %v981_v21 = vsel %vm980_vm11, %v875_v18, %v891_v13 }
 0x30b   :  { %v1325_v9 = vpop.eup %1324 }
 0x30c   :  { %v1327_v10 = vpop.eup %1326  ;;  %v919_v12 = vmul.f32 %v1325_v9, %v1311_v40  ;;  %v918_v15 = vmul.f32 %v1325_v9, %v1680_v39 }
 0x30d   :  { %v951_v19 = vmul.f32 %v1327_v10, %v1676_v38 }
 0x30e   :  { %v985_v16 = vsel %vm984_vm10, %v919_v12, %v935_v11  ;;  %v983_v25 = vsel %vm982_vm13, %v981_v21, %v918_v15 }
 0x30f   :  { %v1329_v17 = vpop.eup %1328  ;;  %v987_v24 = vsel %vm986_vm12, %v985_v16, %v951_v19 }
 0x310   :  { %v978_v20 = vmul.f32 %v1329_v17, %v1683_v41  ;;  %v979_v23 = vmul.f32 %v1329_v17, %v1685_v42 }
 0x312   :  { %v989_v26 = vsel %vm988_vm14, %v987_v24, %v978_v20  ;;  %v1007_v30 = vrot.slane %v979_v23, %v999_v22 }
 0x313   :  { %v993_v27 = vcombine.low %v983_v25, %v989_v26 }
 0x315   :  { %v1000_v29 = vrot.slane %v993_v27, %v999_v22 }
 0x317   :  { %v1008_v31 = vcombine.low %v1000_v29, %v1007_v30 }
 0x319   :  { %1015 = vst.msk [vmem:[%s1709_s3] sm:$0x3f] %vm1014_vm3, %v1008_v31 }

</bundles_post_ra>
